<compile_context>
chip_gen: v7x
topology: tpu7x:2x2x1
jax: 0.10.0
libtpu: 0.0.40
codegen_flags: <defaults>
</compile_context>

<pallas_src>
import jax
import jax.numpy as jnp
from jax.experimental import pallas as pl
from jax.experimental.pallas import tpu as pltpu

BN_EPS = 1e-5
VIT_DIM = 1024
HIDDEN = 100
HIDDEN_PAD = 128
OUT_DIM = 1


def _round_up(x, m):
    return ((x + m - 1) // m) * m


def vit_classifier_kernel(
    x_ref,       # (B, TK)          bf16  flattened-image tile
    wv_ref,      # (TK, 1024)       bf16  ViT stand-in projection tile
    bv_ref,      # (1, 1024)        f32
    w1_ref,      # (1024, 128)      bf16  fc1 (hidden padded 100 -> 128)
    b1_ref,      # (1, 128)         f32
    gamma_ref,   # (1, 128)         f32   BatchNorm1d weight (pad cols = 0)
    beta_ref,    # (1, 128)         f32   BatchNorm1d bias   (pad cols = 0)
    w2_ref,      # (1, 128)         f32   fc2 weight as a row (pad cols = 0)
    b2_ref,      # (1, 1)           f32   fc2 bias
    o_ref,       # (B, 1)           f32
    acc_ref,     # (B, 1024)        f32   VMEM accumulator scratch
):
    k = pl.program_id(0)

    @pl.when(k == 0)
    def _():
        # Seed the accumulator with the embed bias: saves a (B, 1024) VPU pass
        # in the critical last iteration.
        acc_ref[...] = jnp.broadcast_to(bv_ref[...], acc_ref.shape)

    # --- ViT stand-in: K-tiled linear embed to 1024 features (MXU, bf16 in / f32 acc) ---
    acc_ref[...] += jnp.dot(
        x_ref[...], wv_ref[...], preferred_element_type=jnp.float32
    )

    @pl.when(k == pl.num_programs(0) - 1)
    def _():
        feat = acc_ref[...]                                     # (B, 1024) f32

        # --- ClassificationHead.fc1: native bf16 MXU operands, f32 accumulation ---
        h = jnp.dot(
            feat.astype(jnp.bfloat16), w1_ref[...],
            preferred_element_type=jnp.float32,
        )
        h = h + b1_ref[...]                                     # (B, 128)

        # --- BatchNorm1d (training-mode: batch statistics, biased variance) ---
        mean = jnp.mean(h, axis=0, keepdims=True)
        var = jnp.mean((h - mean) * (h - mean), axis=0, keepdims=True)
        h = (h - mean) * jax.lax.rsqrt(var + BN_EPS)
        h = h * gamma_ref[...] + beta_ref[...]

        # --- ReLU ---
        h = jnp.maximum(h, 0.0)

        # --- ClassificationHead.fc2: VPU multiply + lane reduction (avoids N=1 MXU) ---
        out = jnp.sum(h * w2_ref[...], axis=-1, keepdims=True) + b2_ref[...]
        o_ref[...] = out.astype(o_ref.dtype)


def prepare_params(params, din, *, tk=2048):
    """One-time weight preparation, hoisted out of the per-call forward.

    Casts / pads the dominant (Din, 1024) weight to bf16 and pads the head
    params, then keeps the prepared copies on device.  Doing this per forward
    call would cost roughly 3x the kernel's own HBM traffic on a memory-bound
    kernel.  Returns (prepared_dict, tk, din_pad).
    """
    # Clamp tk so tiny inputs run with a single grid step (kt == 1).
    tk = _round_up(min(tk, _round_up(din, 128)), 128)
    din_pad = _round_up(din, tk)

    wv = params["wv"].astype(jnp.bfloat16)
    if din_pad != din:
        wv = jnp.pad(wv, ((0, din_pad - din), (0, 0)))

    # Pad hidden 100 -> 128 so head ops are lane-dense. Padded gamma/beta/bias
    # and padded fc2 columns are zero, so padded lanes contribute nothing.
    pad_h = HIDDEN_PAD - HIDDEN
    prepared = {
        "wv": wv,
        "bv": params["bv"].astype(jnp.float32),
        "w1": jnp.pad(params["w1"], ((0, 0), (0, pad_h))).astype(jnp.bfloat16),
        "b1": jnp.pad(params["b1"], ((0, 0), (0, pad_h))).astype(jnp.float32),
        "gamma": jnp.pad(params["gamma"], ((0, 0), (0, pad_h))).astype(jnp.float32),
        "beta": jnp.pad(params["beta"], ((0, 0), (0, pad_h))).astype(jnp.float32),
        "w2": jnp.pad(
            params["w2"].reshape(1, HIDDEN), ((0, 0), (0, pad_h))
        ).astype(jnp.float32),
        "b2": params["b2"].reshape(1, 1).astype(jnp.float32),
    }
    prepared = jax.device_put(jax.tree_util.tree_map(jnp.asarray, prepared))
    return prepared, tk, din_pad


def vit_classifier_forward(x_nchw, prepared, tk, din_pad):
    B = x_nchw.shape[0]
    x_flat = x_nchw.reshape(B, -1).astype(jnp.bfloat16)
    din = x_flat.shape[1]
    if din_pad != din:
        x_flat = jnp.pad(x_flat, ((0, 0), (0, din_pad - din)))
    kt = din_pad // tk

    def full(shape):
        return pl.BlockSpec(shape, lambda k: (0, 0))

    # Explicit VMEM budget derived from the actual tile footprint (double
    # buffers on the streamed operands + resident head params + scratch).
    vmem_bytes = (
        2 * B * tk * 2                      # x double buffer (bf16)
        + 2 * tk * VIT_DIM * 2              # wv double buffer (bf16)
        + 2 * 1 * VIT_DIM * 4               # bv
        + 2 * VIT_DIM * HIDDEN_PAD * 2      # w1 (bf16)
        + 2 * 5 * HIDDEN_PAD * 4            # b1 / gamma / beta / w2 / b2 (approx)
        + B * VIT_DIM * 4                   # acc scratch
        + 2 * B * OUT_DIM * 4               # output
    )
    vmem_limit = int(min(max(vmem_bytes + (4 << 20), 16 << 20), 48 << 20))

    cost = pl.CostEstimate(
        flops=2 * B * din_pad * VIT_DIM
        + 2 * B * VIT_DIM * HIDDEN_PAD
        + 2 * B * HIDDEN_PAD,
        transcendentals=HIDDEN_PAD,
        bytes_accessed=x_flat.size * 2
        + prepared["wv"].size * 2
        + prepared["w1"].size * 2
        + (prepared["bv"].size + prepared["b1"].size + prepared["gamma"].size
           + prepared["beta"].size + prepared["w2"].size + prepared["b2"].size) * 4
        + B * OUT_DIM * 4,
    )

    return pl.pallas_call(
        vit_classifier_kernel,
        out_shape=jax.ShapeDtypeStruct((B, OUT_DIM), jnp.float32),
        grid_spec=pltpu.PrefetchScalarGridSpec(
            num_scalar_prefetch=0,
            grid=(kt,),
            in_specs=[
                pl.BlockSpec((B, tk), lambda k: (0, k)),          # x tile
                pl.BlockSpec((tk, VIT_DIM), lambda k: (k, 0)),    # wv tile
                full((1, VIT_DIM)),                               # bv
                full((VIT_DIM, HIDDEN_PAD)),                      # w1
                full((1, HIDDEN_PAD)),                            # b1
                full((1, HIDDEN_PAD)),                            # gamma
                full((1, HIDDEN_PAD)),                            # beta
                full((1, HIDDEN_PAD)),                            # w2 row
                full((1, 1)),                                     # b2
            ],
            out_specs=pl.BlockSpec((B, OUT_DIM), lambda k: (0, 0)),
            scratch_shapes=[pltpu.VMEM((B, VIT_DIM), jnp.float32)],
        ),
        compiler_params=pltpu.CompilerParams(
            dimension_semantics=("arbitrary",),
            vmem_limit_bytes=vmem_limit,
        ),
        cost_estimate=cost,
    )(
        x_flat, prepared["wv"], prepared["bv"], prepared["w1"], prepared["b1"],
        prepared["gamma"], prepared["beta"], prepared["w2"], prepared["b2"],
    )


def make_params(key, din, vit_dim=VIT_DIM, hidden=HIDDEN, out_dim=OUT_DIM):
    ks = jax.random.split(key, 6)
    scale_v = 1.0 / jnp.sqrt(din)
    scale_1 = 1.0 / jnp.sqrt(vit_dim)
    scale_2 = 1.0 / jnp.sqrt(hidden)
    return {
        # ViT stand-in
        "wv": jax.random.normal(ks[0], (din, vit_dim), jnp.float32) * scale_v,
        "bv": jax.random.normal(ks[1], (1, vit_dim), jnp.float32) * scale_v,
        # fc1 (1024 -> 100)
        "w1": jax.random.normal(ks[2], (vit_dim, hidden), jnp.float32) * scale_1,
        "b1": jax.random.normal(ks[3], (1, hidden), jnp.float32) * scale_1,
        # BatchNorm1d(100): default init weight=1, bias=0
        "gamma": jnp.ones((1, hidden), jnp.float32),
        "beta": jnp.zeros((1, hidden), jnp.float32),
        # fc2 (100 -> 1)
        "w2": jax.random.normal(ks[4], (hidden, out_dim), jnp.float32) * scale_2,
        "b2": jax.random.normal(ks[5], (1, out_dim), jnp.float32) * scale_2,
    }


def reference_forward(x_nchw, params):
    B = x_nchw.shape[0]
    hp = jax.lax.Precision.HIGHEST
    # Match the kernel's bf16 streaming of x / wv and bf16 fc1 operands
    # (f32 accumulation everywhere).
    x = x_nchw.reshape(B, -1).astype(jnp.bfloat16).astype(jnp.float32)
    wv = params["wv"].astype(jnp.bfloat16).astype(jnp.float32)
    feat = jnp.dot(x, wv, precision=hp) + params["bv"]
    feat_b = feat.astype(jnp.bfloat16).astype(jnp.float32)
    w1_b = params["w1"].astype(jnp.bfloat16).astype(jnp.float32)
    h = jnp.dot(feat_b, w1_b, precision=hp) + params["b1"]
    mean = h.mean(axis=0, keepdims=True)
    var = ((h - mean) ** 2).mean(axis=0, keepdims=True)
    h = (h - mean) * jax.lax.rsqrt(var + BN_EPS)
    h = h * params["gamma"] + params["beta"]
    h = jnp.maximum(h, 0.0)
    return jnp.dot(h, params["w2"], precision=hp) + params["b2"]


if __name__ == "__main__":
    key = jax.random.PRNGKey(0)
    kx, kp = jax.random.split(key)

    # Small NCHW input, consistent with an image-classifier front-end.
    B, C, H, W = 8, 3, 16, 16
    x = jax.random.normal(kx, (B, C, H, W), jnp.float32)
    din = C * H * W

    params = make_params(kp, din=din)

    # Weight preparation is done once (hoisted out of the per-call forward).
    prepared, tk, din_pad = prepare_params(params, din, tk=2048)

    out = vit_classifier_forward(x, prepared, tk, din_pad)
    out = jax.block_until_ready(out)

    ref = reference_forward(x, params)
    assert out.shape == (B, 1), out.shape
    assert jnp.allclose(out, ref, atol=5e-3, rtol=5e-3), (
        f"max abs err = {jnp.max(jnp.abs(out - ref))}"
    )
    print("KERNEL_OK")
</pallas_src>

<mosaic_0001>
module attributes {stable_mosaic.version = 11 : i64} {
  func.func @vit_classifier_kernel(%arg0: i32, %arg1: memref<8x768xbf16, #tpu.memory_space<vmem>>, %arg2: memref<768x1024xbf16, #tpu.memory_space<vmem>>, %arg3: memref<1x1024xf32, #tpu.memory_space<vmem>>, %arg4: memref<1024x128xbf16, #tpu.memory_space<vmem>>, %arg5: memref<1x128xf32, #tpu.memory_space<vmem>>, %arg6: memref<1x128xf32, #tpu.memory_space<vmem>>, %arg7: memref<1x128xf32, #tpu.memory_space<vmem>>, %arg8: memref<1x128xf32, #tpu.memory_space<vmem>>, %arg9: memref<1x1xf32, #tpu.memory_space<vmem>>, %arg10: memref<8x1xf32, #tpu.memory_space<vmem>>, %arg11: memref<8x1024xf32, #tpu.memory_space<vmem>>) attributes {dimension_semantics = [#tpu.dimension_semantics<arbitrary>], iteration_bounds = array<i64: 1>, scalar_prefetch = 0 : i64, scratch_operands = 1 : i64, tpu.core_type = #tpu.core_type<tc>, window_params = [{transform_indices = @transform_0, window_bounds = array<i64: 8, 768>}, {transform_indices = @transform_1, window_bounds = array<i64: 768, 1024>}, {pipeline_mode = #tpu.pipeline_mode<synchronous>, transform_indices = @transform_2, window_bounds = array<i64: 1, 1024>}, {pipeline_mode = #tpu.pipeline_mode<synchronous>, transform_indices = @transform_3, window_bounds = array<i64: 1024, 128>}, {pipeline_mode = #tpu.pipeline_mode<synchronous>, transform_indices = @transform_4, window_bounds = array<i64: 1, 128>}, {pipeline_mode = #tpu.pipeline_mode<synchronous>, transform_indices = @transform_5, window_bounds = array<i64: 1, 128>}, {pipeline_mode = #tpu.pipeline_mode<synchronous>, transform_indices = @transform_6, window_bounds = array<i64: 1, 128>}, {pipeline_mode = #tpu.pipeline_mode<synchronous>, transform_indices = @transform_7, window_bounds = array<i64: 1, 128>}, {pipeline_mode = #tpu.pipeline_mode<synchronous>, transform_indices = @transform_8, window_bounds = array<i64: 1, 1>}, {pipeline_mode = #tpu.pipeline_mode<synchronous>, transform_indices = @transform_9, window_bounds = array<i64: 8, 1>}]} {
    %c0_i32 = arith.constant 0 : i32
    %0 = arith.cmpi eq, %arg0, %c0_i32 : i32
    %1 = arith.extui %0 : i1 to i32
    %c0_i32_0 = arith.constant 0 : i32
    %2 = arith.cmpi ne, %1, %c0_i32_0 : i32
    scf.if %2 {
      %c0_10 = arith.constant 0 : index
      %c0_11 = arith.constant 0 : index
      %12 = vector.load %arg3[%c0_10, %c0_11] : memref<1x1024xf32, #tpu.memory_space<vmem>>, vector<1x1024xf32>
      %13 = vector.shape_cast %12 : vector<1x1024xf32> to vector<1x1024xf32>
      %14 = vector.broadcast %13 : vector<1x1024xf32> to vector<8x1024xf32>
      %c0_12 = arith.constant 0 : index
      %c0_13 = arith.constant 0 : index
      %15 = vector.load %arg11[%c0_12, %c0_13] : memref<8x1024xf32, #tpu.memory_space<vmem>>, vector<8x1024xf32>
      tpu.vector_store %arg11[%c0_12, %c0_13], %14 {strides = array<i32>} : memref<8x1024xf32, #tpu.memory_space<vmem>>, vector<8x1024xf32>,
    } else {
    }
    %c0 = arith.constant 0 : index
    %c0_1 = arith.constant 0 : index
    %3 = vector.load %arg11[%c0, %c0_1] : memref<8x1024xf32, #tpu.memory_space<vmem>>, vector<8x1024xf32>
    %c0_2 = arith.constant 0 : index
    %c0_3 = arith.constant 0 : index
    %4 = vector.load %arg1[%c0_2, %c0_3] : memref<8x768xbf16, #tpu.memory_space<vmem>>, vector<8x768xbf16>
    %c0_4 = arith.constant 0 : index
    %c0_5 = arith.constant 0 : index
    %5 = vector.load %arg2[%c0_4, %c0_5] : memref<768x1024xbf16, #tpu.memory_space<vmem>>, vector<768x1024xbf16>
    %cst = arith.constant dense<0.000000e+00> : vector<8x1024xf32>
    %6 = tpu.matmul %4, %5, %cst {dimension_numbers = #tpu.dot_dimension_numbers<[1], [0], [0], [1], [0, 0, 1, 1], [], []>} : vector<8x768xbf16>, vector<768x1024xbf16>, vector<8x1024xf32> -> vector<8x1024xf32>
    %7 = arith.addf %3, %6 : vector<8x1024xf32>
    %c0_6 = arith.constant 0 : index
    %c0_7 = arith.constant 0 : index
    %8 = vector.load %arg11[%c0_6, %c0_7] : memref<8x1024xf32, #tpu.memory_space<vmem>>, vector<8x1024xf32>
    tpu.vector_store %arg11[%c0_6, %c0_7], %7 {strides = array<i32>} : memref<8x1024xf32, #tpu.memory_space<vmem>>, vector<8x1024xf32>,
    %c0_i32_8 = arith.constant 0 : i32
    %9 = arith.cmpi eq, %arg0, %c0_i32_8 : i32
    %10 = arith.extui %9 : i1 to i32
    %c0_i32_9 = arith.constant 0 : i32
    %11 = arith.cmpi ne, %10, %c0_i32_9 : i32
    scf.if %11 {
      %c0_10 = arith.constant 0 : index
      %c0_11 = arith.constant 0 : index
      %12 = vector.load %arg11[%c0_10, %c0_11] : memref<8x1024xf32, #tpu.memory_space<vmem>>, vector<8x1024xf32>
      %13 = arith.truncf %12 : vector<8x1024xf32> to vector<8x1024xbf16>
      %c0_12 = arith.constant 0 : index
      %c0_13 = arith.constant 0 : index
      %14 = vector.load %arg4[%c0_12, %c0_13] : memref<1024x128xbf16, #tpu.memory_space<vmem>>, vector<1024x128xbf16>
      %cst_14 = arith.constant dense<0.000000e+00> : vector<8x128xf32>
      %15 = tpu.matmul %13, %14, %cst_14 {dimension_numbers = #tpu.dot_dimension_numbers<[1], [0], [0], [1], [0, 0, 1, 1], [], []>} : vector<8x1024xbf16>, vector<1024x128xbf16>, vector<8x128xf32> -> vector<8x128xf32>
      %c0_15 = arith.constant 0 : index
      %c0_16 = arith.constant 0 : index
      %16 = vector.load %arg5[%c0_15, %c0_16] : memref<1x128xf32, #tpu.memory_space<vmem>>, vector<1x128xf32>
      %17 = vector.broadcast %16 : vector<1x128xf32> to vector<8x128xf32>
      %18 = arith.addf %15, %17 : vector<8x128xf32>
      %cst_17 = arith.constant dense<0.000000e+00> : vector<128xf32>
      %19 = vector.multi_reduction <add>, %18, %cst_17 [0] : vector<8x128xf32> to vector<128xf32>
      %20 = vector.shape_cast %19 : vector<128xf32> to vector<1x128xf32>
      %cst_18 = arith.constant 8.000000e+00 : f32
      %21 = vector.broadcast %cst_18 : f32 to vector<1x128xf32>
      %22 = arith.divf %20, %21 : vector<1x128xf32>
      %23 = vector.broadcast %22 : vector<1x128xf32> to vector<8x128xf32>
      %24 = arith.subf %18, %23 : vector<8x128xf32>
      %25 = vector.broadcast %22 : vector<1x128xf32> to vector<8x128xf32>
      %26 = arith.subf %18, %25 : vector<8x128xf32>
      %27 = arith.mulf %24, %26 : vector<8x128xf32>
      %cst_19 = arith.constant dense<0.000000e+00> : vector<128xf32>
      %28 = vector.multi_reduction <add>, %27, %cst_19 [0] : vector<8x128xf32> to vector<128xf32>
      %29 = vector.shape_cast %28 : vector<128xf32> to vector<1x128xf32>
      %cst_20 = arith.constant 8.000000e+00 : f32
      %30 = vector.broadcast %cst_20 : f32 to vector<1x128xf32>
      %31 = arith.divf %29, %30 : vector<1x128xf32>
      %32 = vector.broadcast %22 : vector<1x128xf32> to vector<8x128xf32>
      %33 = arith.subf %18, %32 : vector<8x128xf32>
      %cst_21 = arith.constant 9.99999974E-6 : f32
      %34 = vector.broadcast %cst_21 : f32 to vector<1x128xf32>
      %35 = arith.addf %31, %34 : vector<1x128xf32>
      %36 = math.rsqrt %35 : vector<1x128xf32>
      %37 = vector.broadcast %36 : vector<1x128xf32> to vector<8x128xf32>
      %38 = arith.mulf %33, %37 : vector<8x128xf32>
      %c0_22 = arith.constant 0 : index
      %c0_23 = arith.constant 0 : index
      %39 = vector.load %arg6[%c0_22, %c0_23] : memref<1x128xf32, #tpu.memory_space<vmem>>, vector<1x128xf32>
      %40 = vector.broadcast %39 : vector<1x128xf32> to vector<8x128xf32>
      %41 = arith.mulf %38, %40 : vector<8x128xf32>
      %c0_24 = arith.constant 0 : index
      %c0_25 = arith.constant 0 : index
      %42 = vector.load %arg7[%c0_24, %c0_25] : memref<1x128xf32, #tpu.memory_space<vmem>>, vector<1x128xf32>
      %43 = vector.broadcast %42 : vector<1x128xf32> to vector<8x128xf32>
      %44 = arith.addf %41, %43 : vector<8x128xf32>
      %cst_26 = arith.constant 0.000000e+00 : f32
      %45 = vector.broadcast %cst_26 : f32 to vector<8x128xf32>
      %46 = arith.maximumf %44, %45 : vector<8x128xf32>
      %c0_27 = arith.constant 0 : index
      %c0_28 = arith.constant 0 : index
      %47 = vector.load %arg8[%c0_27, %c0_28] : memref<1x128xf32, #tpu.memory_space<vmem>>, vector<1x128xf32>
      %48 = vector.broadcast %47 : vector<1x128xf32> to vector<8x128xf32>
      %49 = arith.mulf %46, %48 : vector<8x128xf32>
      %cst_29 = arith.constant dense<0.000000e+00> : vector<8xf32>
      %50 = vector.multi_reduction <add>, %49, %cst_29 [1] : vector<8x128xf32> to vector<8xf32>
      %51 = vector.shape_cast %50 : vector<8xf32> to vector<8x1xf32>
      %c0_30 = arith.constant 0 : index
      %c0_31 = arith.constant 0 : index
      %52 = vector.load %arg9[%c0_30, %c0_31] : memref<1x1xf32, #tpu.memory_space<vmem>>, vector<1x1xf32>
      %53 = vector.broadcast %52 : vector<1x1xf32> to vector<8x1xf32>
      %54 = arith.addf %51, %53 : vector<8x1xf32>
      %c0_32 = arith.constant 0 : index
      %c0_33 = arith.constant 0 : index
      %55 = vector.load %arg10[%c0_32, %c0_33] : memref<8x1xf32, #tpu.memory_space<vmem>>, vector<8x1xf32>
      tpu.vector_store %arg10[%c0_32, %c0_33], %54 {strides = array<i32>} : memref<8x1xf32, #tpu.memory_space<vmem>>, vector<8x1xf32>,
    } else {
    }
    return
  }
  func.func @transform_0(%arg0: i32) -> (i32, i32) {
    %c0_i32 = arith.constant 0 : i32
    %c0_i32_0 = arith.constant 0 : i32
    return %c0_i32, %arg0 : i32, i32
  }
  func.func @transform_1(%arg0: i32) -> (i32, i32) {
    %c0_i32 = arith.constant 0 : i32
    %c0_i32_0 = arith.constant 0 : i32
    return %arg0, %c0_i32 : i32, i32
  }
  func.func @transform_2(%arg0: i32) -> (i32, i32) {
    %c0_i32 = arith.constant 0 : i32
    %c0_i32_0 = arith.constant 0 : i32
    %c0_i32_1 = arith.constant 0 : i32
    return %c0_i32, %c0_i32_0 : i32, i32
  }
  func.func @transform_3(%arg0: i32) -> (i32, i32) {
    %c0_i32 = arith.constant 0 : i32
    %c0_i32_0 = arith.constant 0 : i32
    %c0_i32_1 = arith.constant 0 : i32
    return %c0_i32, %c0_i32_0 : i32, i32
  }
  func.func @transform_4(%arg0: i32) -> (i32, i32) {
    %c0_i32 = arith.constant 0 : i32
    %c0_i32_0 = arith.constant 0 : i32
    %c0_i32_1 = arith.constant 0 : i32
    return %c0_i32, %c0_i32_0 : i32, i32
  }
  func.func @transform_5(%arg0: i32) -> (i32, i32) {
    %c0_i32 = arith.constant 0 : i32
    %c0_i32_0 = arith.constant 0 : i32
    %c0_i32_1 = arith.constant 0 : i32
    return %c0_i32, %c0_i32_0 : i32, i32
  }
  func.func @transform_6(%arg0: i32) -> (i32, i32) {
    %c0_i32 = arith.constant 0 : i32
    %c0_i32_0 = arith.constant 0 : i32
    %c0_i32_1 = arith.constant 0 : i32
    return %c0_i32, %c0_i32_0 : i32, i32
  }
  func.func @transform_7(%arg0: i32) -> (i32, i32) {
    %c0_i32 = arith.constant 0 : i32
    %c0_i32_0 = arith.constant 0 : i32
    %c0_i32_1 = arith.constant 0 : i32
    return %c0_i32, %c0_i32_0 : i32, i32
  }
  func.func @transform_8(%arg0: i32) -> (i32, i32) {
    %c0_i32 = arith.constant 0 : i32
    %c0_i32_0 = arith.constant 0 : i32
    %c0_i32_1 = arith.constant 0 : i32
    return %c0_i32, %c0_i32_0 : i32, i32
  }
  func.func @transform_9(%arg0: i32) -> (i32, i32) {
    %c0_i32 = arith.constant 0 : i32
    %c0_i32_0 = arith.constant 0 : i32
    %c0_i32_1 = arith.constant 0 : i32
    return %c0_i32, %c0_i32_0 : i32, i32
  }
}

</mosaic_0001>

<bundles_post_ra>
// kernel: tpu_custom_call.1
= control target key start
LH: loop header
LB: loop body
LE: loop exit
PB: predicated region body
PF: predicated region fallthrough
CT: control target
= control target key end

     0   :  { %s4867_s0 = inlined_call_operand.hbm [shape: bf16[8,768], index: 0, kind: input, shape index: {}]   ;;  %s4868_s1 = inlined_call_operand.hbm [shape: bf16[768,1024], index: 1, kind: input, shape index: {}]   ;;  %s4869_s2 = inlined_call_operand.hbm [shape: f32[1,1024], index: 2, kind: input, shape index: {}]   ;;  %s4870_s3 = inlined_call_operand.hbm [shape: bf16[1024,128], index: 3, kind: input, shape index: {}]   ;;  %s4871_s4 = inlined_call_operand.hbm [shape: f32[1,128], index: 4, kind: input, shape index: {}]   ;;  %s4872_s5 = inlined_call_operand.hbm [shape: f32[1,128], index: 5, kind: input, shape index: {}]   ;;  %s4873_s6 = inlined_call_operand.hbm [shape: f32[1,128], index: 6, kind: input, shape index: {}]   ;;  %s4874_s7 = inlined_call_operand.hbm [shape: f32[1,128], index: 7, kind: input, shape index: {}]   ;;  %s4875_s8 = inlined_call_operand.<no memory space> [shape: f32[1,1], index: 8, kind: input, shape index: {}]   ;;  %s4876_s9 = inlined_call_operand.vmem [shape: f32[8,1], index: 9, kind: output, shape index: {}]  }
   0x1   :  { %v14_v0 = vstv %s4875_s8 }
   0x2   :  { %15 = vst [vmem:[#allocation3] sm:$0x1] %v14_v0 }
   0x3   :  { %16 = vsyncpa [#allocation5], 0 }
   0x4   :  { %17 = vsyncpa [#allocation7], 0 }
   0x5   :  { %18 = vsyncpa [#allocation10], 0 }
   0x6   :  { %19 = vsyncpa [#allocation13], 0 }
   0x7   :  { %20 = vsyncpa [#allocation16], 0  ;;  %s4611_s11 = smov [#allocation6]   ;;  %s4425_s15 = scalar_lea.hbm %s4868_s1, 49152 }
   0x8   :  { %s36_s12 = sshll.u32 %s4611_s11, 4  ;;  %p4426_p0 = scmp.ne.s32.totalorder %s4868_s1, %s4425_s15  ;;  %s37_s12 = int_to_ptr.vmem [resolvable:$true] %s36_s12 }
   0x9   :  { %p4429_p1 = scmp.lt.u32.totalorder %s4425_s15, %s4868_s1 }
   0xb   :  { %p4431_p2 = pnand %p4429_p1, %p4426_p0 }
   0xd   :  { %4434 = shalt.err (!%p4431_p2)
}
   0xe   :  { %s4435_s8 = scalar_lea.vmem %s37_s12, 49152  ;;  %p4440_p4 = scmp.lt.s32.totalorder %s37_s12, %s37_s12 }
   0xf   :  { %p4436_p3 = scmp.ne.s32.totalorder %s37_s12, %s4435_s8  ;;  %p4441_p5 = scmp.lt.s32.totalorder %s4435_s8, %s4435_s8 }
  0x11   :  { %p4442_p6 = por %p4441_p5, %p4440_p4 }
  0x13   :  { %p4443_p7 = pnand %p4442_p6, %p4436_p3 }
  0x15   :  { %4446 = shalt.err (!%p4443_p7)
}
  0x16   :  { %s4612_s20 = smov 512   ;;  %s4613_s21 = smov 32  }
  0x17   :  { %42 = dma.hbm_to_vmem [thread:$0]  %s4868_s1, 49152, %s37_s12, [#allocation7], %s4612_s20, %s4612_s20, %s4613_s21  }
  0x18   :  { %s4614_s24 = smov [#allocation9]   ;;  %s4447_s28 = scalar_lea.hbm %s4870_s3, 8192 }
  0x19   :  { %s58_s25 = sshll.u32 %s4614_s24, 4  ;;  %p4448_p8 = scmp.ne.s32.totalorder %s4870_s3, %s4447_s28  ;;  %s59_s25 = int_to_ptr.vmem [resolvable:$true] %s58_s25 }
  0x1a   :  { %p4451_p9 = scmp.lt.u32.totalorder %s4447_s28, %s4870_s3 }
  0x1c   :  { %p4453_p10 = pnand %p4451_p9, %p4448_p8 }
  0x1e   :  { %4456 = shalt.err (!%p4453_p10)
}
  0x1f   :  { %s4457_s13 = scalar_lea.vmem %s59_s25, 8192  ;;  %p4462_p12 = scmp.lt.s32.totalorder %s59_s25, %s59_s25 }
  0x20   :  { %p4458_p11 = scmp.ne.s32.totalorder %s59_s25, %s4457_s13  ;;  %p4463_p13 = scmp.lt.s32.totalorder %s4457_s13, %s4457_s13 }
  0x22   :  { %p4464_p0 = por %p4463_p13, %p4462_p12 }
  0x24   :  { %p4465_p1 = pnand %p4464_p0, %p4458_p11 }
  0x26   :  { %4468 = shalt.err (!%p4465_p1)
}
  0x27   :  { %s4615_s1 = smov 64   ;;  %s4616_s12 = smov 4  }
  0x28   :  { %64 = dma.hbm_to_vmem [thread:$0]  %s4870_s3, 8192, %s59_s25, [#allocation10], %s4615_s1, %s4615_s1, %s4616_s12  }
  0x29   :  { %s4617_s16 = smov [#allocation12]   ;;  %s4618_s18 = smov [#allocation4]  }
  0x2a   :  { %s81_s17 = sshll.u32 %s4617_s16, 4  ;;  %s27_s19 = sshll.u32 %s4618_s18, 4  ;;  %s82_s17 = int_to_ptr.vmem [resolvable:$true] %s81_s17  ;;  %s28_s19 = int_to_ptr.vmem [resolvable:$true] %s27_s19 }
  0x2b   :  { %s4469_s21 = scalar_lea.hbm %s4872_s5, 16 }
  0x2c   :  { %p4470_p2 = scmp.ne.s32.totalorder %s4872_s5, %s4469_s21  ;;  %p4473_p3 = scmp.lt.u32.totalorder %s4469_s21, %s4872_s5 }
  0x2e   :  { %p4475_p4 = pnand %p4473_p3, %p4470_p2 }
  0x30   :  { %4478 = shalt.err (!%p4475_p4)
}
  0x31   :  { %s4479_s3 = scalar_lea.vmem %s82_s17, 16  ;;  %s4483_s25 = scalar_lea.vmem %s82_s17, 32 }
  0x32   :  { %p4480_p5 = scmp.ne.s32.totalorder %s82_s17, %s4479_s3  ;;  %p4484_p6 = scmp.lt.s32.totalorder %s82_s17, %s82_s17 }
  0x33   :  { %p4485_p7 = scmp.lt.s32.totalorder %s4483_s25, %s4479_s3 }
  0x35   :  { %p4486_p8 = por %p4485_p7, %p4484_p6 }
  0x37   :  { %p4487_p9 = pnand %p4486_p8, %p4480_p5 }
  0x39   :  { %4490 = shalt.err (!%p4487_p9)
}
  0x3a   :  { %84 = dma.hbm_to_vmem [thread:$0]  %s4872_s5, 16, %s82_s17, [#allocation13]  }
  0x3b   :  { %s4491_s10 = scalar_lea.hbm %s4867_s0, 384 }
  0x3c   :  { %p4492_p10 = scmp.ne.s32.totalorder %s4867_s0, %s4491_s10  ;;  %p4495_p11 = scmp.lt.u32.totalorder %s4491_s10, %s4867_s0 }
  0x3e   :  { %p4497_p12 = pnand %p4495_p11, %p4492_p10 }
  0x40   :  { %4500 = shalt.err (!%p4497_p12)
}
  0x41   :  { %s4501_s14 = scalar_lea.vmem %s28_s19, 384  ;;  %p4506_p0 = scmp.lt.s32.totalorder %s28_s19, %s28_s19 }
  0x42   :  { %p4502_p13 = scmp.ne.s32.totalorder %s28_s19, %s4501_s14  ;;  %p4507_p1 = scmp.lt.s32.totalorder %s4501_s14, %s4501_s14 }
  0x44   :  { %p4508_p2 = por %p4507_p1, %p4506_p0 }
  0x46   :  { %p4509_p3 = pnand %p4508_p2, %p4502_p13 }
  0x48   :  { %4512 = shalt.err (!%p4509_p3)
}
  0x49   :  { %30 = dma.hbm_to_vmem [thread:$0]  %s4867_s0, 384, %s28_s19, [#allocation5]  }
  0x4a   :  { %s4619_s16 = smov [#allocation8]   ;;  %s4620_s18 = smov [#allocation11]  }
  0x4b   :  { %s49_s17 = sshll.u32 %s4619_s16, 4  ;;  %s71_s8 = sshll.u32 %s4620_s18, 4  ;;  %s50_s17 = int_to_ptr.vmem [resolvable:$true] %s49_s17  ;;  %s72_s8 = int_to_ptr.vmem [resolvable:$true] %s71_s8 }
  0x4c   :  { %s4513_s22 = scalar_lea.hbm %s4869_s2, 128 }
  0x4d   :  { %p4514_p4 = scmp.ne.s32.totalorder %s4869_s2, %s4513_s22  ;;  %p4517_p5 = scmp.lt.u32.totalorder %s4513_s22, %s4869_s2 }
  0x4f   :  { %p4519_p6 = pnand %p4517_p5, %p4514_p4 }
  0x51   :  { %4522 = shalt.err (!%p4519_p6)
}
  0x52   :  { %s4523_s0 = scalar_lea.vmem %s50_s17, 128  ;;  %p4528_p8 = scmp.lt.s32.totalorder %s50_s17, %s50_s17 }
  0x53   :  { %p4524_p7 = scmp.ne.s32.totalorder %s50_s17, %s4523_s0  ;;  %p4529_p9 = scmp.lt.s32.totalorder %s4523_s0, %s4523_s0 }
  0x55   :  { %p4530_p10 = por %p4529_p9, %p4528_p8 }
  0x57   :  { %p4531_p11 = pnand %p4530_p10, %p4524_p7 }
  0x59   :  { %4534 = shalt.err (!%p4531_p11)
}
  0x5a   :  { %52 = dma.hbm_to_vmem [thread:$0]  %s4869_s2, 128, %s50_s17, [#allocation7]  }
  0x5b   :  { %s4535_s29 = scalar_lea.hbm %s4871_s4, 16 }
  0x5c   :  { %p4536_p12 = scmp.ne.s32.totalorder %s4871_s4, %s4535_s29  ;;  %p4539_p13 = scmp.lt.u32.totalorder %s4535_s29, %s4871_s4 }
  0x5e   :  { %p4541_p0 = pnand %p4539_p13, %p4536_p12 }
  0x60   :  { %4544 = shalt.err (!%p4541_p0)
}
  0x61   :  { %s4545_s1 = scalar_lea.vmem %s72_s8, 16  ;;  %s4549_s12 = scalar_lea.vmem %s72_s8, 32 }
  0x62   :  { %p4546_p1 = scmp.ne.s32.totalorder %s72_s8, %s4545_s1  ;;  %p4550_p2 = scmp.lt.s32.totalorder %s72_s8, %s72_s8 }
  0x63   :  { %p4551_p3 = scmp.lt.s32.totalorder %s4549_s12, %s4545_s1 }
  0x65   :  { %p4552_p4 = por %p4551_p3, %p4550_p2 }
  0x67   :  { %p4553_p5 = pnand %p4552_p4, %p4546_p1 }
  0x69   :  { %4556 = shalt.err (!%p4553_p5)
}
  0x6a   :  { %74 = dma.hbm_to_vmem [thread:$0]  %s4871_s4, 16, %s72_s8, [#allocation10]  }
  0x6b   :  { %s4621_s5 = smov [#allocation14]   ;;  %s4622_s16 = smov [#allocation15]  }
  0x6c   :  { %s91_s15 = sshll.u32 %s4621_s5, 4  ;;  %s101_s17 = sshll.u32 %s4622_s16, 4  ;;  %s92_s15 = int_to_ptr.vmem [resolvable:$true] %s91_s15  ;;  %s102_s17 = int_to_ptr.vmem [resolvable:$true] %s101_s17 }
  0x6d   :  { %s4557_s21 = scalar_lea.hbm %s4873_s6, 16 }
  0x6e   :  { %p4558_p6 = scmp.ne.s32.totalorder %s4873_s6, %s4557_s21  ;;  %p4561_p7 = scmp.lt.u32.totalorder %s4557_s21, %s4873_s6 }
  0x70   :  { %p4563_p8 = pnand %p4561_p7, %p4558_p6 }
  0x72   :  { %4566 = shalt.err (!%p4563_p8)
}
  0x73   :  { %s4567_s4 = scalar_lea.vmem %s92_s15, 16  ;;  %s4571_s8 = scalar_lea.vmem %s92_s15, 32 }
  0x74   :  { %p4568_p9 = scmp.ne.s32.totalorder %s92_s15, %s4567_s4  ;;  %p4572_p10 = scmp.lt.s32.totalorder %s92_s15, %s92_s15 }
  0x75   :  { %p4573_p11 = scmp.lt.s32.totalorder %s4571_s8, %s4567_s4 }
  0x77   :  { %p4574_p12 = por %p4573_p11, %p4572_p10 }
  0x79   :  { %p4575_p13 = pnand %p4574_p12, %p4568_p9 }
  0x7b   :  { %4578 = shalt.err (!%p4575_p13)
}
  0x7c   :  { %94 = dma.hbm_to_vmem [thread:$0]  %s4873_s6, 16, %s92_s15, [#allocation13]  }
  0x7d   :  { %s4579_s27 = scalar_lea.hbm %s4874_s7, 16 }
  0x7e   :  { %p4580_p0 = scmp.ne.s32.totalorder %s4874_s7, %s4579_s27  ;;  %p4583_p1 = scmp.lt.u32.totalorder %s4579_s27, %s4874_s7 }
  0x80   :  { %p4585_p2 = pnand %p4583_p1, %p4580_p0 }
  0x82   :  { %4588 = shalt.err (!%p4585_p2)
}
  0x83   :  { %s4589_s11 = scalar_lea.vmem %s102_s17, 16  ;;  %s4593_s13 = scalar_lea.vmem %s102_s17, 32 }
  0x84   :  { %p4590_p3 = scmp.ne.s32.totalorder %s102_s17, %s4589_s11  ;;  %p4594_p4 = scmp.lt.s32.totalorder %s102_s17, %s102_s17 }
  0x85   :  { %p4595_p5 = scmp.lt.s32.totalorder %s4593_s13, %s4589_s11 }
  0x87   :  { %p4596_p6 = por %p4595_p5, %p4594_p4 }
  0x89   :  { %p4597_p7 = pnand %p4596_p6, %p4590_p3 }
  0x8b   :  { %4600 = shalt.err (!%p4597_p7)
}
  0x8c   :  { %104 = dma.hbm_to_vmem [thread:$0]  %s4874_s7, 16, %s102_s17, [#allocation16]  }
  0x8d   :  { %4601 = dma.done.wait [#allocation5], 384  }
  0x8e   :  { %4602 = vsyncadd [#allocation5], 4294966912 }
  0x8f   :  { %4603 = dma.done.wait [#allocation7], 49280  }
  0x90   :  { %4604 = vsyncadd [#allocation7], 4294918016 }
  0x91   :  { %4605 = dma.done.wait [#allocation10], 8208  }
  0x92   :  { %4606 = vsyncadd [#allocation10], 4294959088 }
  0x93   :  { %4607 = dma.done.wait [#allocation13], 32  }
  0x94   :  { %4608 = vsyncadd [#allocation13], 4294967264 }
  0x95   :  { %4609 = dma.done.wait [#allocation16], 16  }
  0x96   :  { %4610 = vsyncadd [#allocation16], 4294967280  ;;  %v197_v1 = vld [vmem:[#allocation6] sm:$0xff]  ;;  %v4772_v54 = vld [vmem:[#allocation4] sm:$0xff]  ;;  %vm3783_vm0 = vcmask 7168  }
  0x97   :  { %v201_v2 = vld [vmem:[#allocation6 + $0x20] sm:$0xff]  ;;  %v4774_v55 = vld [vmem:[#allocation4 + $0x8] sm:$0xff]  ;;  %v4778_v59 = vcombine.high %v4772_v54, %v4772_v54 }
  0x98   :  { %v325_v3 = vld [vmem:[#allocation6 + $0x400] sm:$0xff]  ;;  %v3801_v4 = vcombine.high %v197_v1, %v201_v2  ;;  %v3800_v6 = vcombine.low %v197_v1, %v201_v2  ;;  %v4782_v60 = vcombine.high %v4774_v55, %v4774_v55 }
  0x99   :  { %v329_v5 = vld [vmem:[#allocation6 + $0x420] sm:$0xff]  ;;  %2554 = vmatprep.mubr.bf16.mxu0 %v4778_v59 }
  0x9a   :  { %v205_v7 = vld [vmem:[#allocation6 + $0x40] sm:$0xff]  ;;  %v3929_v9 = vcombine.high %v325_v3, %v329_v5  ;;  %v3928_v10 = vcombine.low %v325_v3, %v329_v5  ;;  %2522 = vmatprep.subr.bf16.mxu0 %v3801_v4  ;;  %2595 = vmatprep.mubr.bf16.mxu1 %v4782_v60 }
  0x9b   :  { %v209_v8 = vld [vmem:[#allocation6 + $0x60] sm:$0xff]  ;;  %2523 = vmatpush1.bf16.msra.mxu0 %v3800_v6 }
  0x9c   :  { %v3809_v11 = vcombine.high %v205_v7, %v209_v8  ;;  %v333_v12 = vld [vmem:[#allocation6 + $0x440] sm:$0xff]  ;;  %2563 = vmatprep.subr.bf16.mxu1 %v3929_v9  ;;  %v3808_v19 = vcombine.low %v205_v7, %v209_v8 }
  0x9d   :  { %v337_v13 = vld [vmem:[#allocation6 + $0x460] sm:$0xff]  ;;  %2564 = vmatpush1.bf16.msra.mxu1 %v3928_v10 }
  0x9e   :  { %v213_v14 = vld [vmem:[#allocation6 + $0x80] sm:$0xff]  ;;  %v3937_v15 = vcombine.high %v333_v12, %v337_v13  ;;  %2524 = vmatprep.subr.bf16.mxu0 %v3809_v11  ;;  %v3936_v20 = vcombine.low %v333_v12, %v337_v13 }
  0x9f   :  { %v217_v16 = vld [vmem:[#allocation6 + $0xa0] sm:$0xff]  ;;  %2525 = vmatpush1.bf16.msra.mxu0 %v3808_v19 }
  0xa0   :  { %v341_v17 = vld [vmem:[#allocation6 + $0x480] sm:$0xff]  ;;  %v3817_v21 = vcombine.high %v213_v14, %v217_v16  ;;  %2565 = vmatprep.subr.bf16.mxu1 %v3937_v15  ;;  %v3816_v27 = vcombine.low %v213_v14, %v217_v16 }
  0xa1   :  { %v345_v18 = vld [vmem:[#allocation6 + $0x4a0] sm:$0xff]  ;;  %2566 = vmatpush1.bf16.msra.mxu1 %v3936_v20 }
  0xa2   :  { %v3945_v22 = vcombine.high %v341_v17, %v345_v18  ;;  %v221_v23 = vld [vmem:[#allocation6 + $0xc0] sm:$0xff]  ;;  %2526 = vmatprep.subr.bf16.mxu0 %v3817_v21  ;;  %v3944_v28 = vcombine.low %v341_v17, %v345_v18 }
  0xa3   :  { %v225_v24 = vld [vmem:[#allocation6 + $0xe0] sm:$0xff]  ;;  %2527 = vmatpush1.bf16.msra.mxu0 %v3816_v27 }
  0xa4   :  { %v349_v25 = vld [vmem:[#allocation6 + $0x4c0] sm:$0xff]  ;;  %v3825_v29 = vcombine.high %v221_v23, %v225_v24  ;;  %2567 = vmatprep.subr.bf16.mxu1 %v3945_v22  ;;  %v3824_v35 = vcombine.low %v221_v23, %v225_v24 }
  0xa5   :  { %v353_v26 = vld [vmem:[#allocation6 + $0x4e0] sm:$0xff]  ;;  %2568 = vmatpush1.bf16.msra.mxu1 %v3944_v28 }
  0xa6   :  { %v3953_v30 = vcombine.high %v349_v25, %v353_v26  ;;  %v229_v31 = vld [vmem:[#allocation6 + $0x100] sm:$0xff]  ;;  %2528 = vmatprep.subr.bf16.mxu0 %v3825_v29  ;;  %v3952_v36 = vcombine.low %v349_v25, %v353_v26 }
  0xa7   :  { %v233_v32 = vld [vmem:[#allocation6 + $0x120] sm:$0xff]  ;;  %2529 = vmatpush1.bf16.msra.mxu0 %v3824_v35 }
  0xa8   :  { %v357_v33 = vld [vmem:[#allocation6 + $0x500] sm:$0xff]  ;;  %v3833_v37 = vcombine.high %v229_v31, %v233_v32  ;;  %2569 = vmatprep.subr.bf16.mxu1 %v3953_v30  ;;  %v3832_v43 = vcombine.low %v229_v31, %v233_v32 }
  0xa9   :  { %v361_v34 = vld [vmem:[#allocation6 + $0x520] sm:$0xff]  ;;  %2570 = vmatpush1.bf16.msra.mxu1 %v3952_v36 }
  0xaa   :  { %v3961_v38 = vcombine.high %v357_v33, %v361_v34  ;;  %v237_v39 = vld [vmem:[#allocation6 + $0x140] sm:$0xff]  ;;  %2530 = vmatprep.subr.bf16.mxu0 %v3833_v37  ;;  %v3960_v44 = vcombine.low %v357_v33, %v361_v34 }
  0xab   :  { %v241_v40 = vld [vmem:[#allocation6 + $0x160] sm:$0xff]  ;;  %2531 = vmatpush1.bf16.msra.mxu0 %v3832_v43 }
  0xac   :  { %v365_v41 = vld [vmem:[#allocation6 + $0x540] sm:$0xff]  ;;  %v3841_v45 = vcombine.high %v237_v39, %v241_v40  ;;  %2571 = vmatprep.subr.bf16.mxu1 %v3961_v38  ;;  %v3840_v51 = vcombine.low %v237_v39, %v241_v40 }
  0xad   :  { %v369_v42 = vld [vmem:[#allocation6 + $0x560] sm:$0xff]  ;;  %2572 = vmatpush1.bf16.msra.mxu1 %v3960_v44 }
  0xae   :  { %v3969_v46 = vcombine.high %v365_v41, %v369_v42  ;;  %v245_v47 = vld [vmem:[#allocation6 + $0x180] sm:$0xff]  ;;  %2532 = vmatprep.subr.bf16.mxu0 %v3841_v45  ;;  %v3968_v52 = vcombine.low %v365_v41, %v369_v42 }
  0xaf   :  { %v249_v48 = vld [vmem:[#allocation6 + $0x1a0] sm:$0xff]  ;;  %2533 = vmatpush1.bf16.msra.mxu0 %v3840_v51 }
  0xb0   :  { %v373_v49 = vld [vmem:[#allocation6 + $0x580] sm:$0xff]  ;;  %v3849_v53 = vcombine.high %v245_v47, %v249_v48  ;;  %2573 = vmatprep.subr.bf16.mxu1 %v3969_v46  ;;  %v3848_v63 = vcombine.low %v245_v47, %v249_v48 }
  0xb1   :  { %v377_v50 = vld [vmem:[#allocation6 + $0x5a0] sm:$0xff]  ;;  %2574 = vmatpush1.bf16.msra.mxu1 %v3968_v52 }
  0xb2   :  { %v3977_v56 = vcombine.high %v373_v49, %v377_v50  ;;  %v253_v57 = vld [vmem:[#allocation6 + $0x1c0] sm:$0xff]  ;;  %2534 = vmatprep.subr.bf16.mxu0 %v3849_v53  ;;  %v3976_v0 = vcombine.low %v373_v49, %v377_v50 }
  0xb3   :  { %v257_v58 = vld [vmem:[#allocation6 + $0x1e0] sm:$0xff]  ;;  %2535 = vmatpush1.bf16.msra.mxu0 %v3848_v63 }
  0xb4   :  { %v381_v61 = vld [vmem:[#allocation6 + $0x5c0] sm:$0xff]  ;;  %v3857_v1 = vcombine.high %v253_v57, %v257_v58  ;;  %2575 = vmatprep.subr.bf16.mxu1 %v3977_v56  ;;  %v3856_v7 = vcombine.low %v253_v57, %v257_v58 }
  0xb5   :  { %v385_v62 = vld [vmem:[#allocation6 + $0x5e0] sm:$0xff]  ;;  %2576 = vmatpush1.bf16.msra.mxu1 %v3976_v0 }
  0xb6   :  { %v3985_v2 = vcombine.high %v381_v61, %v385_v62  ;;  %v261_v3 = vld [vmem:[#allocation6 + $0x200] sm:$0xff]  ;;  %2536 = vmatprep.subr.bf16.mxu0 %v3857_v1  ;;  %v3984_v8 = vcombine.low %v381_v61, %v385_v62 }
  0xb7   :  { %v265_v4 = vld [vmem:[#allocation6 + $0x220] sm:$0xff]  ;;  %2537 = vmatpush1.bf16.msra.mxu0 %v3856_v7 }
  0xb8   :  { %v389_v5 = vld [vmem:[#allocation6 + $0x600] sm:$0xff]  ;;  %v3865_v9 = vcombine.high %v261_v3, %v265_v4  ;;  %2577 = vmatprep.subr.bf16.mxu1 %v3985_v2  ;;  %v3864_v15 = vcombine.low %v261_v3, %v265_v4 }
  0xb9   :  { %v393_v6 = vld [vmem:[#allocation6 + $0x620] sm:$0xff]  ;;  %2578 = vmatpush1.bf16.msra.mxu1 %v3984_v8 }
  0xba   :  { %v3993_v10 = vcombine.high %v389_v5, %v393_v6  ;;  %v269_v11 = vld [vmem:[#allocation6 + $0x240] sm:$0xff]  ;;  %2538 = vmatprep.subr.bf16.mxu0 %v3865_v9  ;;  %v3992_v16 = vcombine.low %v389_v5, %v393_v6  ;;  %v198_v9 = vld [vmem:[#allocation6 + $0x8] sm:$0xff] }
  0xbb   :  { %v273_v12 = vld [vmem:[#allocation6 + $0x260] sm:$0xff]  ;;  %2539 = vmatpush1.bf16.msra.mxu0 %v3864_v15 }
  0xbc   :  { %v397_v13 = vld [vmem:[#allocation6 + $0x640] sm:$0xff]  ;;  %v3873_v17 = vcombine.high %v269_v11, %v273_v12  ;;  %2579 = vmatprep.subr.bf16.mxu1 %v3993_v10  ;;  %v3872_v23 = vcombine.low %v269_v11, %v273_v12  ;;  %v202_v10 = vld [vmem:[#allocation6 + $0x28] sm:$0xff] }
  0xbd   :  { %v401_v14 = vld [vmem:[#allocation6 + $0x660] sm:$0xff]  ;;  %2580 = vmatpush1.bf16.msra.mxu1 %v3992_v16 }
  0xbe   :  { %v4001_v18 = vcombine.high %v397_v13, %v401_v14  ;;  %v277_v19 = vld [vmem:[#allocation6 + $0x280] sm:$0xff]  ;;  %2540 = vmatprep.subr.bf16.mxu0 %v3873_v17  ;;  %v4000_v24 = vcombine.low %v397_v13, %v401_v14  ;;  %v3803_v14 = vcombine.high %v198_v9, %v202_v10  ;;  %v4788_v17 = vcombine.low %v4772_v54, %v4772_v54 }
  0xbf   :  { %v281_v20 = vld [vmem:[#allocation6 + $0x2a0] sm:$0xff]  ;;  %2541 = vmatpush1.bf16.msra.mxu0 %v3872_v23  ;;  %v3802_v23 = vcombine.low %v198_v9, %v202_v10 }
  0xc0   :  { %v405_v21 = vld [vmem:[#allocation6 + $0x680] sm:$0xff]  ;;  %v3881_v25 = vcombine.high %v277_v19, %v281_v20  ;;  %2581 = vmatprep.subr.bf16.mxu1 %v4001_v18  ;;  %v3880_v31 = vcombine.low %v277_v19, %v281_v20  ;;  %v206_v18 = vld [vmem:[#allocation6 + $0x48] sm:$0xff]  ;;  %v4790_v20 = vld [vmem:[#allocation4 + $0x10] sm:$0xff] }
  0xc1   :  { %v409_v22 = vld [vmem:[#allocation6 + $0x6a0] sm:$0xff]  ;;  %2582 = vmatpush1.bf16.msra.mxu1 %v4000_v24  ;;  %v210_v19 = vld [vmem:[#allocation6 + $0x68] sm:$0xff] }
  0xc2   :  { %v4009_v26 = vcombine.high %v405_v21, %v409_v22  ;;  %v285_v27 = vld [vmem:[#allocation6 + $0x2c0] sm:$0xff]  ;;  %2542 = vmatprep.subr.bf16.mxu0 %v3881_v25  ;;  %v4008_v32 = vcombine.low %v405_v21, %v409_v22  ;;  %v4794_v21 = vcombine.low %v4774_v55, %v4774_v55  ;;  %v3811_v54 = vcombine.high %v206_v18, %v210_v19 }
  0xc3   :  { %v289_v28 = vld [vmem:[#allocation6 + $0x2e0] sm:$0xff]  ;;  %2543 = vmatpush1.bf16.msra.mxu0 %v3880_v31 }
  0xc4   :  { %v413_v29 = vld [vmem:[#allocation6 + $0x6c0] sm:$0xff]  ;;  %v3889_v33 = vcombine.high %v285_v27, %v289_v28  ;;  %2583 = vmatprep.subr.bf16.mxu1 %v4009_v26  ;;  %v3888_v39 = vcombine.low %v285_v27, %v289_v28  ;;  %v214_v27 = vld [vmem:[#allocation6 + $0x88] sm:$0xff] }
  0xc5   :  { %v417_v30 = vld [vmem:[#allocation6 + $0x6e0] sm:$0xff]  ;;  %2584 = vmatpush1.bf16.msra.mxu1 %v4008_v32  ;;  %v218_v28 = vld [vmem:[#allocation6 + $0xa8] sm:$0xff] }
  0xc6   :  { %v4017_v34 = vcombine.high %v413_v29, %v417_v30  ;;  %v293_v35 = vld [vmem:[#allocation6 + $0x300] sm:$0xff]  ;;  %2544 = vmatprep.subr.bf16.mxu0 %v3889_v33  ;;  %v4016_v40 = vcombine.low %v413_v29, %v417_v30  ;;  %v4798_v29 = vcombine.high %v4790_v20, %v4790_v20  ;;  %v3810_v30 = vcombine.low %v206_v18, %v210_v19 }
  0xc7   :  { %v297_v36 = vld [vmem:[#allocation6 + $0x320] sm:$0xff]  ;;  %2545 = vmatpush1.bf16.msra.mxu0 %v3888_v39 }
  0xc8   :  { %v421_v37 = vld [vmem:[#allocation6 + $0x700] sm:$0xff]  ;;  %v3897_v41 = vcombine.high %v293_v35, %v297_v36  ;;  %2585 = vmatprep.subr.bf16.mxu1 %v4017_v34  ;;  %v3896_v47 = vcombine.low %v293_v35, %v297_v36  ;;  %v222_v34 = vld [vmem:[#allocation6 + $0xc8] sm:$0xff]  ;;  %v3819_v35 = vcombine.high %v214_v27, %v218_v28 }
  0xc9   :  { %v425_v38 = vld [vmem:[#allocation6 + $0x720] sm:$0xff]  ;;  %2586 = vmatpush1.bf16.msra.mxu1 %v4016_v40  ;;  %v226_v36 = vld [vmem:[#allocation6 + $0xe8] sm:$0xff] }
  0xca   :  { %v4025_v42 = vcombine.high %v421_v37, %v425_v38  ;;  %v301_v43 = vld [vmem:[#allocation6 + $0x340] sm:$0xff]  ;;  %2546 = vmatprep.subr.bf16.mxu0 %v3897_v41  ;;  %v4024_v48 = vcombine.low %v421_v37, %v425_v38  ;;  %v3818_v38 = vcombine.low %v214_v27, %v218_v28  ;;  %v274_v27 = vld [vmem:[#allocation6 + $0x268] sm:$0xff] }
  0xcb   :  { %v305_v44 = vld [vmem:[#allocation6 + $0x360] sm:$0xff]  ;;  %2547 = vmatpush1.bf16.msra.mxu0 %v3896_v47 }
  0xcc   :  { %v429_v45 = vld [vmem:[#allocation6 + $0x740] sm:$0xff]  ;;  %v3905_v49 = vcombine.high %v301_v43, %v305_v44  ;;  %2587 = vmatprep.subr.bf16.mxu1 %v4025_v42  ;;  %v3904_v57 = vcombine.low %v301_v43, %v305_v44  ;;  %v230_v42 = vld [vmem:[#allocation6 + $0x108] sm:$0xff]  ;;  %v3827_v43 = vcombine.high %v222_v34, %v226_v36 }
  0xcd   :  { %v433_v46 = vld [vmem:[#allocation6 + $0x760] sm:$0xff]  ;;  %2588 = vmatpush1.bf16.msra.mxu1 %v4024_v48  ;;  %v234_v44 = vld [vmem:[#allocation6 + $0x128] sm:$0xff] }
  0xce   :  { %v4033_v50 = vcombine.high %v429_v45, %v433_v46  ;;  %v309_v51 = vld [vmem:[#allocation6 + $0x380] sm:$0xff]  ;;  %2548 = vmatprep.subr.bf16.mxu0 %v3905_v49  ;;  %v4032_v58 = vcombine.low %v429_v45, %v433_v46  ;;  %v3826_v46 = vcombine.low %v222_v34, %v226_v36  ;;  %v282_v34 = vld [vmem:[#allocation6 + $0x2a8] sm:$0xff] }
  0xcf   :  { %v313_v52 = vld [vmem:[#allocation6 + $0x3a0] sm:$0xff]  ;;  %2549 = vmatpush1.bf16.msra.mxu0 %v3904_v57 }
  0xd0   :  { %v437_v53 = vld [vmem:[#allocation6 + $0x780] sm:$0xff]  ;;  %v3913_v61 = vcombine.high %v309_v51, %v313_v52  ;;  %2589 = vmatprep.subr.bf16.mxu1 %v4033_v50  ;;  %v3912_v3 = vcombine.low %v309_v51, %v313_v52  ;;  %v238_v50 = vld [vmem:[#allocation6 + $0x148] sm:$0xff]  ;;  %v3835_v51 = vcombine.high %v230_v42, %v234_v44 }
  0xd1   :  { %v441_v56 = vld [vmem:[#allocation6 + $0x7a0] sm:$0xff]  ;;  %2590 = vmatpush1.bf16.msra.mxu1 %v4032_v58  ;;  %v242_v52 = vld [vmem:[#allocation6 + $0x168] sm:$0xff] }
  0xd2   :  { %v4041_v62 = vcombine.high %v437_v53, %v441_v56  ;;  %v317_v63 = vld [vmem:[#allocation6 + $0x3c0] sm:$0xff]  ;;  %2550 = vmatprep.subr.bf16.mxu0 %v3913_v61  ;;  %v4040_v4 = vcombine.low %v437_v53, %v441_v56  ;;  %v3834_v56 = vcombine.low %v230_v42, %v234_v44  ;;  %v290_v42 = vld [vmem:[#allocation6 + $0x2e8] sm:$0xff] }
  0xd3   :  { %v321_v0 = vld [vmem:[#allocation6 + $0x3e0] sm:$0xff]  ;;  %2551 = vmatpush1.bf16.msra.mxu0 %v3912_v3 }
  0xd4   :  { %v445_v1 = vld [vmem:[#allocation6 + $0x7c0] sm:$0xff]  ;;  %v3921_v5 = vcombine.high %v317_v63, %v321_v0  ;;  %2591 = vmatprep.subr.bf16.mxu1 %v4041_v62  ;;  %v3920_v11 = vcombine.low %v317_v63, %v321_v0  ;;  %v246_v62 = vld [vmem:[#allocation6 + $0x188] sm:$0xff]  ;;  %v3843_v63 = vcombine.high %v238_v50, %v242_v52 }
  0xd5   :  { %v449_v2 = vld [vmem:[#allocation6 + $0x7e0] sm:$0xff]  ;;  %2592 = vmatpush1.bf16.msra.mxu1 %v4040_v4  ;;  %v250_v0 = vld [vmem:[#allocation6 + $0x1a8] sm:$0xff] }
  0xd6   :  { %v4049_v6 = vcombine.high %v445_v1, %v449_v2  ;;  %v453_v7 = vld [vmem:[#allocation6 + $0x800] sm:$0xff]  ;;  %2552 = vmatprep.subr.bf16.mxu0 %v3921_v5  ;;  %v4048_v12 = vcombine.low %v445_v1, %v449_v2  ;;  %v3842_v2 = vcombine.low %v238_v50, %v242_v52  ;;  %v3850_v10 = vcombine.low %v246_v62, %v250_v0  ;;  %v298_v50 = vld [vmem:[#allocation6 + $0x328] sm:$0xff] }
  0xd7   :  { %v457_v8 = vld [vmem:[#allocation6 + $0x820] sm:$0xff]  ;;  %2553 = vmatpush1.bf16.msra.mxu0 %v3920_v11 }
  0xd8   :  { %v4057_v13 = vcombine.high %v453_v7, %v457_v8  ;;  %2593 = vmatprep.subr.bf16.mxu1 %v4049_v6  ;;  %v461_v15 = vld [vmem:[#allocation6 + $0x840] sm:$0xff]  ;;  %v4056_v22 = vcombine.low %v453_v7, %v457_v8  ;;  %v254_v6 = vld [vmem:[#allocation6 + $0x1c8] sm:$0xff]  ;;  %v3851_v7 = vcombine.high %v246_v62, %v250_v0 }
  0xd9   :  { %v465_v16 = vld [vmem:[#allocation6 + $0x860] sm:$0xff]  ;;  %2594 = vmatpush1.bf16.msra.mxu1 %v4048_v12  ;;  %v258_v8 = vld [vmem:[#allocation6 + $0x1e8] sm:$0xff] }
  0xda   :  { %2604 = vmatprep.subr.bf16.mxu0 %v4057_v13  ;;  %v4065_v24 = vcombine.high %v461_v15, %v465_v16  ;;  %v469_v25 = vld [vmem:[#allocation6 + $0x880] sm:$0xff]  ;;  %2645 = vmatprep.subr.bf16.mxu1 %v3803_v14  ;;  %v4064_v55 = vcombine.low %v461_v15, %v465_v16  ;;  %v262_v14 = vld [vmem:[#allocation6 + $0x208] sm:$0xff]  ;;  %v3859_v15 = vcombine.high %v254_v6, %v258_v8 }
  0xdb   :  { %v473_v26 = vld [vmem:[#allocation6 + $0x8a0] sm:$0xff]  ;;  %2555 = vmatmul.mubr.bf16.vlgmr.msra.gmra.mrb[0].mxu0 %v4788_v17  ;;  %v266_v16 = vld [vmem:[#allocation6 + $0x228] sm:$0xff]  ;;  %v3858_v19 = vcombine.low %v254_v6, %v258_v8 }
  0xdc   :  { %2596 = vmatmul.mubr.bf16.vlgmr.msra.gmra.mrb[0].mxu1 %v4794_v21  ;;  %2605 = vmatpush1.bf16.msra.mxu0 %v4056_v22  ;;  %v4073_v31 = vcombine.high %v469_v25, %v473_v26  ;;  %v477_v32 = vld [vmem:[#allocation6 + $0x8c0] sm:$0xff]  ;;  %v4072_v37 = vcombine.low %v469_v25, %v473_v26  ;;  %v270_v25 = vld [vmem:[#allocation6 + $0x248] sm:$0xff]  ;;  %v3867_v26 = vcombine.high %v262_v14, %v266_v16 }
  0xdd   :  { %2646 = vmatpush1.bf16.msra.mxu1 %v3802_v23  ;;  %2606 = vmatprep.subr.bf16.mxu0 %v4065_v24  ;;  %v481_v33 = vld [vmem:[#allocation6 + $0x8e0] sm:$0xff]  ;;  %v3866_v28 = vcombine.low %v262_v14, %v266_v16  ;;  %v3874_v36 = vcombine.low %v270_v25, %v274_v27  ;;  %v306_v62 = vld [vmem:[#allocation6 + $0x368] sm:$0xff] }
  0xde   :  { %2647 = vmatprep.subr.bf16.mxu1 %v3811_v54  ;;  %2636 = vmatprep.mubr.bf16.mxu0 %v4798_v29  ;;  %v4081_v39 = vcombine.high %v477_v32, %v481_v33  ;;  %v485_v40 = vld [vmem:[#allocation6 + $0x900] sm:$0xff]  ;;  %v4080_v45 = vcombine.low %v477_v32, %v481_v33  ;;  %v278_v32 = vld [vmem:[#allocation6 + $0x288] sm:$0xff]  ;;  %v3875_v33 = vcombine.high %v270_v25, %v274_v27 }
  0xdf   :  { %2677 = vmatprep.mubr.bf16.mxu1 %v4778_v59  ;;  %v489_v41 = vld [vmem:[#allocation6 + $0x920] sm:$0xff]  ;;  %v3882_v44 = vcombine.low %v278_v32, %v282_v34  ;;  %v314_v6 = vld [vmem:[#allocation6 + $0x3a8] sm:$0xff] }
  0xe0   :  { %2607 = vmatpush1.bf16.msra.mxu0 %v4064_v55  ;;  %v4089_v47 = vcombine.high %v485_v40, %v489_v41  ;;  %v493_v48 = vld [vmem:[#allocation6 + $0x940] sm:$0xff]  ;;  %v4088_v53 = vcombine.low %v485_v40, %v489_v41  ;;  %v286_v40 = vld [vmem:[#allocation6 + $0x2c8] sm:$0xff]  ;;  %v3883_v41 = vcombine.high %v278_v32, %v282_v34 }
  0xe1   :  { %2648 = vmatpush1.bf16.msra.mxu1 %v3810_v30  ;;  %2608 = vmatprep.subr.bf16.mxu0 %v4073_v31  ;;  %v497_v49 = vld [vmem:[#allocation6 + $0x960] sm:$0xff]  ;;  %v3890_v52 = vcombine.low %v286_v40, %v290_v42  ;;  %v322_v14 = vld [vmem:[#allocation6 + $0x3e8] sm:$0xff] }
  0xe2   :  { %2649 = vmatprep.subr.bf16.mxu1 %v3819_v35  ;;  %v4097_v57 = vcombine.high %v493_v48, %v497_v49  ;;  %v501_v58 = vld [vmem:[#allocation6 + $0x980] sm:$0xff]  ;;  %v4096_v1 = vcombine.low %v493_v48, %v497_v49  ;;  %v294_v48 = vld [vmem:[#allocation6 + $0x308] sm:$0xff]  ;;  %v3891_v49 = vcombine.high %v286_v40, %v290_v42 }
  0xe3   :  { %v505_v61 = vld [vmem:[#allocation6 + $0x9a0] sm:$0xff]  ;;  %v3898_v0 = vcombine.low %v294_v48, %v298_v50  ;;  %v458_v25 = vld [vmem:[#allocation6 + $0x828] sm:$0xff] }
  0xe4   :  { %2609 = vmatpush1.bf16.msra.mxu0 %v4072_v37  ;;  %v4105_v3 = vcombine.high %v501_v58, %v505_v61  ;;  %v509_v4 = vld [vmem:[#allocation6 + $0x9c0] sm:$0xff]  ;;  %v4104_v9 = vcombine.low %v501_v58, %v505_v61  ;;  %v302_v58 = vld [vmem:[#allocation6 + $0x348] sm:$0xff]  ;;  %v3899_v61 = vcombine.high %v294_v48, %v298_v50 }
  0xe5   :  { %2650 = vmatpush1.bf16.msra.mxu1 %v3818_v38  ;;  %2610 = vmatprep.subr.bf16.mxu0 %v4081_v39  ;;  %v513_v5 = vld [vmem:[#allocation6 + $0x9e0] sm:$0xff]  ;;  %v3906_v8 = vcombine.low %v302_v58, %v306_v62  ;;  %v466_v32 = vld [vmem:[#allocation6 + $0x868] sm:$0xff] }
  0xe6   :  { %2651 = vmatprep.subr.bf16.mxu1 %v3827_v43  ;;  %v4113_v11 = vcombine.high %v509_v4, %v513_v5  ;;  %v517_v12 = vld [vmem:[#allocation6 + $0xa00] sm:$0xff]  ;;  %v4112_v18 = vcombine.low %v509_v4, %v513_v5  ;;  %v310_v4 = vld [vmem:[#allocation6 + $0x388] sm:$0xff]  ;;  %v3907_v5 = vcombine.high %v302_v58, %v306_v62 }
  0xe7   :  { %v521_v13 = vld [vmem:[#allocation6 + $0xa20] sm:$0xff]  ;;  %v3914_v16 = vcombine.low %v310_v4, %v314_v6  ;;  %v470_v40 = vld [vmem:[#allocation6 + $0x888] sm:$0xff] }
  0xe8   :  { %2611 = vmatpush1.bf16.msra.mxu0 %v4080_v45  ;;  %v4121_v22 = vcombine.high %v517_v12, %v521_v13  ;;  %v525_v23 = vld [vmem:[#allocation6 + $0xa40] sm:$0xff]  ;;  %v4120_v54 = vcombine.low %v517_v12, %v521_v13  ;;  %v318_v12 = vld [vmem:[#allocation6 + $0x3c8] sm:$0xff]  ;;  %v3915_v13 = vcombine.high %v310_v4, %v314_v6 }
  0xe9   :  { %2652 = vmatpush1.bf16.msra.mxu1 %v3826_v46  ;;  %2612 = vmatprep.subr.bf16.mxu0 %v4089_v47  ;;  %v529_v24 = vld [vmem:[#allocation6 + $0xa60] sm:$0xff]  ;;  %v3922_v27 = vcombine.low %v318_v12, %v322_v14  ;;  %v482_v48 = vld [vmem:[#allocation6 + $0x8e8] sm:$0xff] }
  0xea   :  { %2653 = vmatprep.subr.bf16.mxu1 %v3835_v51  ;;  %v4129_v55 = vcombine.high %v525_v23, %v529_v24  ;;  %v533_v30 = vld [vmem:[#allocation6 + $0xa80] sm:$0xff]  ;;  %v4128_v35 = vcombine.low %v525_v23, %v529_v24  ;;  %v454_v23 = vld [vmem:[#allocation6 + $0x808] sm:$0xff]  ;;  %v3923_v24 = vcombine.high %v318_v12, %v322_v14 }
  0xeb   :  { %v537_v31 = vld [vmem:[#allocation6 + $0xaa0] sm:$0xff]  ;;  %v490_v58 = vld [vmem:[#allocation6 + $0x928] sm:$0xff] }
  0xec   :  { %2613 = vmatpush1.bf16.msra.mxu0 %v4088_v53  ;;  %v4137_v37 = vcombine.high %v533_v30, %v537_v31  ;;  %v541_v38 = vld [vmem:[#allocation6 + $0xac0] sm:$0xff]  ;;  %v4136_v43 = vcombine.low %v533_v30, %v537_v31  ;;  %v462_v30 = vld [vmem:[#allocation6 + $0x848] sm:$0xff]  ;;  %v4059_v31 = vcombine.high %v454_v23, %v458_v25 }
  0xed   :  { %2654 = vmatpush1.bf16.msra.mxu1 %v3834_v56  ;;  %2614 = vmatprep.subr.bf16.mxu0 %v4097_v57  ;;  %v545_v39 = vld [vmem:[#allocation6 + $0xae0] sm:$0xff]  ;;  %v498_v4 = vld [vmem:[#allocation6 + $0x968] sm:$0xff] }
  0xee   :  { %2655 = vmatprep.subr.bf16.mxu1 %v3843_v63  ;;  %v4145_v45 = vcombine.high %v541_v38, %v545_v39  ;;  %v549_v46 = vld [vmem:[#allocation6 + $0xb00] sm:$0xff]  ;;  %v4144_v51 = vcombine.low %v541_v38, %v545_v39  ;;  %v342_v38 = vld [vmem:[#allocation6 + $0x488] sm:$0xff] }
  0xef   :  { %v553_v47 = vld [vmem:[#allocation6 + $0xb20] sm:$0xff]  ;;  %v346_v39 = vld [vmem:[#allocation6 + $0x4a8] sm:$0xff] }
  0xf0   :  { %2615 = vmatpush1.bf16.msra.mxu0 %v4096_v1  ;;  %v4153_v53 = vcombine.high %v549_v46, %v553_v47  ;;  %v557_v56 = vld [vmem:[#allocation6 + $0xb40] sm:$0xff]  ;;  %v4152_v63 = vcombine.low %v549_v46, %v553_v47  ;;  %v354_v46 = vld [vmem:[#allocation6 + $0x4e8] sm:$0xff] }
  0xf1   :  { %2656 = vmatpush1.bf16.msra.mxu1 %v3842_v2  ;;  %2616 = vmatprep.subr.bf16.mxu0 %v4105_v3  ;;  %v561_v57 = vld [vmem:[#allocation6 + $0xb60] sm:$0xff]  ;;  %v478_v47 = vld [vmem:[#allocation6 + $0x8c8] sm:$0xff] }
  0xf2   :  { %2657 = vmatprep.subr.bf16.mxu1 %v3851_v7  ;;  %v4161_v1 = vcombine.high %v557_v56, %v561_v57  ;;  %v565_v2 = vld [vmem:[#allocation6 + $0xb80] sm:$0xff]  ;;  %v4160_v7 = vcombine.low %v557_v56, %v561_v57  ;;  %v362_v56 = vld [vmem:[#allocation6 + $0x528] sm:$0xff]  ;;  %v4082_v62 = vcombine.low %v478_v47, %v482_v48 }
  0xf3   :  { %v569_v3 = vld [vmem:[#allocation6 + $0xba0] sm:$0xff]  ;;  %v486_v57 = vld [vmem:[#allocation6 + $0x908] sm:$0xff] }
  0xf4   :  { %2617 = vmatpush1.bf16.msra.mxu0 %v4104_v9  ;;  %v4169_v9 = vcombine.high %v565_v2, %v569_v3  ;;  %v4090_v6 = vcombine.low %v486_v57, %v490_v58  ;;  %v506_v12 = vld [vmem:[#allocation6 + $0x9a8] sm:$0xff] }
  0xf5   :  { %2658 = vmatpush1.bf16.msra.mxu1 %v3850_v10  ;;  %2618 = vmatprep.subr.bf16.mxu0 %v4113_v11  ;;  %v573_v10 = vld [vmem:[#allocation6 + $0xbc0] sm:$0xff] }
  0xf6   :  { %2659 = vmatprep.subr.bf16.mxu1 %v3859_v15  ;;  %v577_v11 = vld [vmem:[#allocation6 + $0xbe0] sm:$0xff]  ;;  %v4168_v15 = vcombine.low %v565_v2, %v569_v3  ;;  %v370_v2 = vld [vmem:[#allocation6 + $0x568] sm:$0xff] }
  0xf7   :  { %v494_v3 = vld [vmem:[#allocation6 + $0x948] sm:$0xff] }
  0xf8   :  { %2619 = vmatpush1.bf16.msra.mxu0 %v4112_v18  ;;  %v4177_v18 = vcombine.high %v573_v10, %v577_v11  ;;  %v4098_v14 = vcombine.low %v494_v3, %v498_v4 }
  0xf9   :  { %2660 = vmatpush1.bf16.msra.mxu1 %v3858_v19  ;;  %2620 = vmatprep.subr.bf16.mxu0 %v4121_v22  ;;  %v326_v19 = vld [vmem:[#allocation6 + $0x408] sm:$0xff] }
  0xfa   :  { %2661 = vmatprep.subr.bf16.mxu1 %v3867_v26  ;;  %v330_v22 = vld [vmem:[#allocation6 + $0x428] sm:$0xff]  ;;  %v4176_v26 = vcombine.low %v573_v10, %v577_v11 }
  0xfb   :  { %v3930_v34 = vcombine.low %v326_v19, %v330_v22  ;;  %v378_v10 = vld [vmem:[#allocation6 + $0x5a8] sm:$0xff] }
  0xfc   :  { %2621 = vmatpush1.bf16.msra.mxu0 %v4120_v54  ;;  %v3931_v54 = vcombine.high %v326_v19, %v330_v22  ;;  %v502_v11 = vld [vmem:[#allocation6 + $0x988] sm:$0xff] }
  0xfd   :  { %2662 = vmatpush1.bf16.msra.mxu1 %v3866_v28  ;;  %2622 = vmatprep.subr.bf16.mxu0 %v4129_v55  ;;  %v334_v28 = vld [vmem:[#allocation6 + $0x448] sm:$0xff] }
  0xfe   :  { %2663 = vmatprep.subr.bf16.mxu1 %v3875_v33  ;;  %v338_v55 = vld [vmem:[#allocation6 + $0x468] sm:$0xff]  ;;  %v4806_v33 = vcombine.low %v4790_v20, %v4790_v20  ;;  %v4066_v20 = vcombine.low %v462_v30, %v466_v32 }
  0xff   :  { %v3938_v42 = vcombine.low %v334_v28, %v338_v55  ;;  %v386_v19 = vld [vmem:[#allocation6 + $0x5e8] sm:$0xff] }
 0x100   :  { %2623 = vmatpush1.bf16.msra.mxu0 %v4128_v35  ;;  %v4058_v35 = vcombine.low %v454_v23, %v458_v25  ;;  %v510_v22 = vld [vmem:[#allocation6 + $0x9c8] sm:$0xff]  ;;  %v4106_v25 = vcombine.low %v502_v11, %v506_v12 }
 0x101   :  { %2664 = vmatpush1.bf16.msra.mxu1 %v3874_v36  ;;  %2624 = vmatprep.subr.bf16.mxu0 %v4137_v37  ;;  %v3939_v36 = vcombine.high %v334_v28, %v338_v55  ;;  %v4067_v37 = vcombine.high %v462_v30, %v466_v32  ;;  %v514_v23 = vld [vmem:[#allocation6 + $0x9e8] sm:$0xff] }
 0x102   :  { %2665 = vmatprep.subr.bf16.mxu1 %v3883_v41  ;;  %v474_v41 = vld [vmem:[#allocation6 + $0x8a8] sm:$0xff]  ;;  %v4114_v32 = vcombine.low %v510_v22, %v514_v23 }
 0x103   :  { %v4074_v50 = vcombine.low %v470_v40, %v474_v41  ;;  %v394_v28 = vld [vmem:[#allocation6 + $0x628] sm:$0xff] }
 0x104   :  { %2625 = vmatpush1.bf16.msra.mxu0 %v4136_v43  ;;  %v3947_v43 = vcombine.high %v342_v38, %v346_v39  ;;  %v518_v55 = vld [vmem:[#allocation6 + $0xa08] sm:$0xff] }
 0x105   :  { %2666 = vmatpush1.bf16.msra.mxu1 %v3882_v44  ;;  %2626 = vmatprep.subr.bf16.mxu0 %v4145_v45  ;;  %v4075_v44 = vcombine.high %v470_v40, %v474_v41  ;;  %v350_v45 = vld [vmem:[#allocation6 + $0x4c8] sm:$0xff] }
 0x106   :  { %2667 = vmatprep.subr.bf16.mxu1 %v3891_v49  ;;  %v3946_v49 = vcombine.low %v342_v38, %v346_v39  ;;  %v522_v30 = vld [vmem:[#allocation6 + $0xa28] sm:$0xff] }
 0x107   :  { %v526_v38 = vld [vmem:[#allocation6 + $0xa48] sm:$0xff]  ;;  %v4122_v41 = vcombine.low %v518_v55, %v522_v30 }
 0x108   :  { %2627 = vmatpush1.bf16.msra.mxu0 %v4144_v51  ;;  %v3955_v51 = vcombine.high %v350_v45, %v354_v46  ;;  %v530_v39 = vld [vmem:[#allocation6 + $0xa68] sm:$0xff] }
 0x109   :  { %2668 = vmatpush1.bf16.msra.mxu1 %v3890_v52  ;;  %2628 = vmatprep.subr.bf16.mxu0 %v4153_v53  ;;  %v4083_v52 = vcombine.high %v478_v47, %v482_v48  ;;  %v358_v53 = vld [vmem:[#allocation6 + $0x508] sm:$0xff]  ;;  %v4130_v48 = vcombine.low %v526_v38, %v530_v39 }
 0x10a   :  { %2669 = vmatprep.subr.bf16.mxu1 %v3899_v61  ;;  %v3954_v61 = vcombine.low %v350_v45, %v354_v46  ;;  %v534_v45 = vld [vmem:[#allocation6 + $0xa88] sm:$0xff] }
 0x10b   :  { %v538_v46 = vld [vmem:[#allocation6 + $0xaa8] sm:$0xff] }
 0x10c   :  { %2629 = vmatpush1.bf16.msra.mxu0 %v4152_v63  ;;  %v3963_v63 = vcombine.high %v358_v53, %v362_v56 }
 0x10d   :  { %2670 = vmatpush1.bf16.msra.mxu1 %v3898_v0  ;;  %2630 = vmatprep.subr.bf16.mxu0 %v4161_v1  ;;  %v4091_v0 = vcombine.high %v486_v57, %v490_v58  ;;  %v366_v1 = vld [vmem:[#allocation6 + $0x548] sm:$0xff]  ;;  %v4138_v58 = vcombine.low %v534_v45, %v538_v46 }
 0x10e   :  { %2671 = vmatprep.subr.bf16.mxu1 %v3907_v5  ;;  %v3962_v5 = vcombine.low %v358_v53, %v362_v56  ;;  %v542_v53 = vld [vmem:[#allocation6 + $0xac8] sm:$0xff] }
 0x10f   :  { %v546_v56 = vld [vmem:[#allocation6 + $0xae8] sm:$0xff] }
 0x110   :  { %2631 = vmatpush1.bf16.msra.mxu0 %v4160_v7  ;;  %v3971_v7 = vcombine.high %v366_v1, %v370_v2 }
 0x111   :  { %2672 = vmatpush1.bf16.msra.mxu1 %v3906_v8  ;;  %2632 = vmatprep.subr.bf16.mxu0 %v4169_v9  ;;  %v4099_v8 = vcombine.high %v494_v3, %v498_v4  ;;  %v374_v9 = vld [vmem:[#allocation6 + $0x588] sm:$0xff]  ;;  %v4146_v4 = vcombine.low %v542_v53, %v546_v56 }
 0x112   :  { %2673 = vmatprep.subr.bf16.mxu1 %v3915_v13  ;;  %v3970_v13 = vcombine.low %v366_v1, %v370_v2  ;;  %v550_v1 = vld [vmem:[#allocation6 + $0xb08] sm:$0xff] }
 0x113   :  { %v554_v2 = vld [vmem:[#allocation6 + $0xb28] sm:$0xff] }
 0x114   :  { %2633 = vmatpush1.bf16.msra.mxu0 %v4168_v15  ;;  %v3979_v15 = vcombine.high %v374_v9, %v378_v10 }
 0x115   :  { %2674 = vmatpush1.bf16.msra.mxu1 %v3914_v16  ;;  %2634 = vmatprep.subr.bf16.mxu0 %v4177_v18  ;;  %v4107_v16 = vcombine.high %v502_v11, %v506_v12  ;;  %v382_v18 = vld [vmem:[#allocation6 + $0x5c8] sm:$0xff]  ;;  %v4154_v12 = vcombine.low %v550_v1, %v554_v2 }
 0x116   :  { %2675 = vmatprep.subr.bf16.mxu1 %v3923_v24  ;;  %v3978_v24 = vcombine.low %v374_v9, %v378_v10  ;;  %v558_v9 = vld [vmem:[#allocation6 + $0xb48] sm:$0xff] }
 0x117   :  { %v562_v10 = vld [vmem:[#allocation6 + $0xb68] sm:$0xff] }
 0x118   :  { %2635 = vmatpush1.bf16.msra.mxu0 %v4176_v26  ;;  %v3987_v26 = vcombine.high %v382_v18, %v386_v19 }
 0x119   :  { %2676 = vmatpush1.bf16.msra.mxu1 %v3922_v27  ;;  %2686 = vmatprep.subr.bf16.mxu0 %v3931_v54  ;;  %v4115_v27 = vcombine.high %v510_v22, %v514_v23  ;;  %v390_v54 = vld [vmem:[#allocation6 + $0x608] sm:$0xff]  ;;  %v4162_v23 = vcombine.low %v558_v9, %v562_v10 }
 0x11a   :  { %2727 = vmatprep.subr.bf16.mxu1 %v4059_v31  ;;  %v3986_v31 = vcombine.low %v382_v18, %v386_v19  ;;  %v3994_v40 = vcombine.low %v390_v54, %v394_v28  ;;  %v566_v18 = vld [vmem:[#allocation6 + $0xb88] sm:$0xff] }
 0x11b   :  { %2637 = vmatmul.mubr.bf16.vlgmr.msra.gmra.mrb[4].mxu0 %v4806_v33  ;;  %v570_v19 = vld [vmem:[#allocation6 + $0xba8] sm:$0xff] }
 0x11c   :  { %2678 = vmatmul.mubr.bf16.vlgmr.msra.gmra.mrb[4].mxu1 %v4788_v17  ;;  %2687 = vmatpush1.bf16.msra.mxu0 %v3930_v34  ;;  %v3995_v34 = vcombine.high %v390_v54, %v394_v28  ;;  %v574_v54 = vld [vmem:[#allocation6 + $0xbc8] sm:$0xff] }
 0x11d   :  { %2728 = vmatpush1.bf16.msra.mxu1 %v4058_v35  ;;  %2688 = vmatprep.subr.bf16.mxu0 %v3939_v36  ;;  %v4123_v35 = vcombine.high %v518_v55, %v522_v30  ;;  %v398_v36 = vld [vmem:[#allocation6 + $0x648] sm:$0xff]  ;;  %v4170_v30 = vcombine.low %v566_v18, %v570_v19 }
 0x11e   :  { %2729 = vmatprep.subr.bf16.mxu1 %v4067_v37  ;;  %2718 = vmatprep.mubr.bf16.mxu0 %v4782_v60  ;;  %v402_v37 = vld [vmem:[#allocation6 + $0x668] sm:$0xff] }
 0x11f   :  { %2759 = vmatprep.mubr.bf16.mxu1 %v4798_v29  ;;  %v4002_v47 = vcombine.low %v398_v36, %v402_v37  ;;  %v578_v28 = vld [vmem:[#allocation6 + $0xbe8] sm:$0xff] }
 0x120   :  { %2689 = vmatpush1.bf16.msra.mxu0 %v3938_v42  ;;  %v4003_v42 = vcombine.high %v398_v36, %v402_v37  ;;  %v327_v36 = vld [vmem:[#allocation6 + $0x410] sm:$0xff] }
 0x121   :  { %2730 = vmatpush1.bf16.msra.mxu1 %v4066_v20  ;;  %2690 = vmatprep.subr.bf16.mxu0 %v3947_v43  ;;  %v4131_v20 = vcombine.high %v526_v38, %v530_v39  ;;  %v406_v43 = vld [vmem:[#allocation6 + $0x688] sm:$0xff]  ;;  %v331_v37 = vld [vmem:[#allocation6 + $0x430] sm:$0xff]  ;;  %v4178_v39 = vcombine.low %v574_v54, %v578_v28 }
 0x122   :  { %2731 = vmatprep.subr.bf16.mxu1 %v4075_v44  ;;  %v410_v44 = vld [vmem:[#allocation6 + $0x6a8] sm:$0xff] }
 0x123   :  { %v4010_v57 = vcombine.low %v406_v43, %v410_v44 }
 0x124   :  { %2691 = vmatpush1.bf16.msra.mxu0 %v3946_v49  ;;  %v4011_v49 = vcombine.high %v406_v43, %v410_v44  ;;  %v335_v43 = vld [vmem:[#allocation6 + $0x450] sm:$0xff] }
 0x125   :  { %2732 = vmatpush1.bf16.msra.mxu1 %v4074_v50  ;;  %2692 = vmatprep.subr.bf16.mxu0 %v3955_v51  ;;  %v4139_v50 = vcombine.high %v534_v45, %v538_v46  ;;  %v414_v51 = vld [vmem:[#allocation6 + $0x6c8] sm:$0xff]  ;;  %v339_v44 = vld [vmem:[#allocation6 + $0x470] sm:$0xff]  ;;  %v3932_v46 = vcombine.low %v327_v36, %v331_v37 }
 0x126   :  { %2733 = vmatprep.subr.bf16.mxu1 %v4083_v52  ;;  %v418_v52 = vld [vmem:[#allocation6 + $0x6e8] sm:$0xff] }
 0x127   :  { %v4018_v3 = vcombine.low %v414_v51, %v418_v52 }
 0x128   :  { %2693 = vmatpush1.bf16.msra.mxu0 %v3954_v61  ;;  %v4019_v61 = vcombine.high %v414_v51, %v418_v52  ;;  %v343_v51 = vld [vmem:[#allocation6 + $0x490] sm:$0xff] }
 0x129   :  { %2734 = vmatpush1.bf16.msra.mxu1 %v4082_v62  ;;  %2694 = vmatprep.subr.bf16.mxu0 %v3963_v63  ;;  %v4147_v62 = vcombine.high %v542_v53, %v546_v56  ;;  %v422_v63 = vld [vmem:[#allocation6 + $0x708] sm:$0xff]  ;;  %v347_v52 = vld [vmem:[#allocation6 + $0x4b0] sm:$0xff]  ;;  %v3940_v56 = vcombine.low %v335_v43, %v339_v44 }
 0x12a   :  { %2735 = vmatprep.subr.bf16.mxu1 %v4091_v0  ;;  %v426_v0 = vld [vmem:[#allocation6 + $0x728] sm:$0xff] }
 0x12b   :  { %v4026_v11 = vcombine.low %v422_v63, %v426_v0 }
 0x12c   :  { %2695 = vmatpush1.bf16.msra.mxu0 %v3962_v5  ;;  %v4027_v5 = vcombine.high %v422_v63, %v426_v0  ;;  %v351_v63 = vld [vmem:[#allocation6 + $0x4d0] sm:$0xff] }
 0x12d   :  { %2736 = vmatpush1.bf16.msra.mxu1 %v4090_v6  ;;  %2696 = vmatprep.subr.bf16.mxu0 %v3971_v7  ;;  %v4155_v6 = vcombine.high %v550_v1, %v554_v2  ;;  %v430_v7 = vld [vmem:[#allocation6 + $0x748] sm:$0xff]  ;;  %v355_v0 = vld [vmem:[#allocation6 + $0x4f0] sm:$0xff]  ;;  %v3948_v2 = vcombine.low %v343_v51, %v347_v52 }
 0x12e   :  { %2737 = vmatprep.subr.bf16.mxu1 %v4099_v8  ;;  %v434_v8 = vld [vmem:[#allocation6 + $0x768] sm:$0xff] }
 0x12f   :  { %v4034_v22 = vcombine.low %v430_v7, %v434_v8 }
 0x130   :  { %2697 = vmatpush1.bf16.msra.mxu0 %v3970_v13  ;;  %v4035_v13 = vcombine.high %v430_v7, %v434_v8  ;;  %v359_v7 = vld [vmem:[#allocation6 + $0x510] sm:$0xff] }
 0x131   :  { %2738 = vmatpush1.bf16.msra.mxu1 %v4098_v14  ;;  %2698 = vmatprep.subr.bf16.mxu0 %v3979_v15  ;;  %v4163_v14 = vcombine.high %v558_v9, %v562_v10  ;;  %v438_v15 = vld [vmem:[#allocation6 + $0x788] sm:$0xff]  ;;  %v363_v8 = vld [vmem:[#allocation6 + $0x530] sm:$0xff]  ;;  %v3956_v10 = vcombine.low %v351_v63, %v355_v0 }
 0x132   :  { %2739 = vmatprep.subr.bf16.mxu1 %v4107_v16  ;;  %v442_v16 = vld [vmem:[#allocation6 + $0x7a8] sm:$0xff] }
 0x133   :  { %v4042_v55 = vcombine.low %v438_v15, %v442_v16 }
 0x134   :  { %2699 = vmatpush1.bf16.msra.mxu0 %v3978_v24  ;;  %v4043_v24 = vcombine.high %v438_v15, %v442_v16  ;;  %v367_v15 = vld [vmem:[#allocation6 + $0x550] sm:$0xff] }
 0x135   :  { %2740 = vmatpush1.bf16.msra.mxu1 %v4106_v25  ;;  %2700 = vmatprep.subr.bf16.mxu0 %v3987_v26  ;;  %v4171_v25 = vcombine.high %v566_v18, %v570_v19  ;;  %v446_v26 = vld [vmem:[#allocation6 + $0x7c8] sm:$0xff]  ;;  %v371_v16 = vld [vmem:[#allocation6 + $0x570] sm:$0xff]  ;;  %v3964_v19 = vcombine.low %v359_v7, %v363_v8 }
 0x136   :  { %2741 = vmatprep.subr.bf16.mxu1 %v4115_v27  ;;  %v450_v27 = vld [vmem:[#allocation6 + $0x7e8] sm:$0xff] }
 0x137   :  { %v4050_v38 = vcombine.low %v446_v26, %v450_v27 }
 0x138   :  { %2701 = vmatpush1.bf16.msra.mxu0 %v3986_v31  ;;  %v4051_v31 = vcombine.high %v446_v26, %v450_v27  ;;  %v375_v26 = vld [vmem:[#allocation6 + $0x590] sm:$0xff] }
 0x139   :  { %2742 = vmatpush1.bf16.msra.mxu1 %v4114_v32  ;;  %2702 = vmatprep.subr.bf16.mxu0 %v3995_v34  ;;  %v4179_v32 = vcombine.high %v574_v54, %v578_v28  ;;  %v199_v34 = vld [vmem:[#allocation6 + $0x10] sm:$0xff]  ;;  %v3972_v28 = vcombine.low %v367_v15, %v371_v16 }
 0x13a   :  { %2743 = vmatprep.subr.bf16.mxu1 %v4123_v35  ;;  %v203_v35 = vld [vmem:[#allocation6 + $0x30] sm:$0xff] }
 0x13b   :  { %v3804_v45 = vcombine.low %v199_v34, %v203_v35  ;;  %v379_v27 = vld [vmem:[#allocation6 + $0x5b0] sm:$0xff] }
 0x13c   :  { %2703 = vmatpush1.bf16.msra.mxu0 %v3994_v40  ;;  %v3805_v40 = vcombine.high %v199_v34, %v203_v35  ;;  %v383_v34 = vld [vmem:[#allocation6 + $0x5d0] sm:$0xff] }
 0x13d   :  { %2744 = vmatpush1.bf16.msra.mxu1 %v4122_v41  ;;  %2704 = vmatprep.subr.bf16.mxu0 %v4003_v42  ;;  %v3933_v41 = vcombine.high %v327_v36, %v331_v37  ;;  %v207_v42 = vld [vmem:[#allocation6 + $0x50] sm:$0xff]  ;;  %v3980_v37 = vcombine.low %v375_v26, %v379_v27 }
 0x13e   :  { %2745 = vmatprep.subr.bf16.mxu1 %v4131_v20  ;;  %v211_v20 = vld [vmem:[#allocation6 + $0x70] sm:$0xff] }
 0x13f   :  { %v3812_v53 = vcombine.low %v207_v42, %v211_v20  ;;  %v387_v35 = vld [vmem:[#allocation6 + $0x5f0] sm:$0xff] }
 0x140   :  { %2705 = vmatpush1.bf16.msra.mxu0 %v4002_v47  ;;  %v3813_v47 = vcombine.high %v207_v42, %v211_v20  ;;  %v391_v42 = vld [vmem:[#allocation6 + $0x610] sm:$0xff] }
 0x141   :  { %2746 = vmatpush1.bf16.msra.mxu1 %v4130_v48  ;;  %2706 = vmatprep.subr.bf16.mxu0 %v4011_v49  ;;  %v3941_v48 = vcombine.high %v335_v43, %v339_v44  ;;  %v215_v49 = vld [vmem:[#allocation6 + $0x90] sm:$0xff]  ;;  %v3988_v44 = vcombine.low %v383_v34, %v387_v35 }
 0x142   :  { %2747 = vmatprep.subr.bf16.mxu1 %v4139_v50  ;;  %v219_v50 = vld [vmem:[#allocation6 + $0xb0] sm:$0xff] }
 0x143   :  { %v3820_v1 = vcombine.low %v215_v49, %v219_v50  ;;  %v395_v20 = vld [vmem:[#allocation6 + $0x630] sm:$0xff] }
 0x144   :  { %2707 = vmatpush1.bf16.msra.mxu0 %v4010_v57  ;;  %v3821_v57 = vcombine.high %v215_v49, %v219_v50  ;;  %v399_v49 = vld [vmem:[#allocation6 + $0x650] sm:$0xff] }
 0x145   :  { %2748 = vmatpush1.bf16.msra.mxu1 %v4138_v58  ;;  %2708 = vmatprep.subr.bf16.mxu0 %v4019_v61  ;;  %v3949_v58 = vcombine.high %v343_v51, %v347_v52  ;;  %v223_v61 = vld [vmem:[#allocation6 + $0xd0] sm:$0xff]  ;;  %v3996_v52 = vcombine.low %v391_v42, %v395_v20 }
 0x146   :  { %2749 = vmatprep.subr.bf16.mxu1 %v4147_v62  ;;  %v227_v62 = vld [vmem:[#allocation6 + $0xf0] sm:$0xff] }
 0x147   :  { %v3828_v9 = vcombine.low %v223_v61, %v227_v62  ;;  %v403_v50 = vld [vmem:[#allocation6 + $0x670] sm:$0xff] }
 0x148   :  { %2709 = vmatpush1.bf16.msra.mxu0 %v4018_v3  ;;  %v3829_v3 = vcombine.high %v223_v61, %v227_v62  ;;  %v407_v61 = vld [vmem:[#allocation6 + $0x690] sm:$0xff] }
 0x149   :  { %2750 = vmatpush1.bf16.msra.mxu1 %v4146_v4  ;;  %2710 = vmatprep.subr.bf16.mxu0 %v4027_v5  ;;  %v3957_v4 = vcombine.high %v351_v63, %v355_v0  ;;  %v231_v5 = vld [vmem:[#allocation6 + $0x110] sm:$0xff]  ;;  %v4004_v0 = vcombine.low %v399_v49, %v403_v50 }
 0x14a   :  { %2751 = vmatprep.subr.bf16.mxu1 %v4155_v6  ;;  %v235_v6 = vld [vmem:[#allocation6 + $0x130] sm:$0xff] }
 0x14b   :  { %v3836_v18 = vcombine.low %v231_v5, %v235_v6  ;;  %v411_v62 = vld [vmem:[#allocation6 + $0x6b0] sm:$0xff] }
 0x14c   :  { %2711 = vmatpush1.bf16.msra.mxu0 %v4026_v11  ;;  %v3837_v11 = vcombine.high %v231_v5, %v235_v6  ;;  %v415_v5 = vld [vmem:[#allocation6 + $0x6d0] sm:$0xff] }
 0x14d   :  { %2752 = vmatpush1.bf16.msra.mxu1 %v4154_v12  ;;  %2712 = vmatprep.subr.bf16.mxu0 %v4035_v13  ;;  %v3965_v12 = vcombine.high %v359_v7, %v363_v8  ;;  %v239_v13 = vld [vmem:[#allocation6 + $0x150] sm:$0xff]  ;;  %v4012_v8 = vcombine.low %v407_v61, %v411_v62 }
 0x14e   :  { %2753 = vmatprep.subr.bf16.mxu1 %v4163_v14  ;;  %v243_v14 = vld [vmem:[#allocation6 + $0x170] sm:$0xff] }
 0x14f   :  { %v3844_v54 = vcombine.low %v239_v13, %v243_v14  ;;  %v419_v6 = vld [vmem:[#allocation6 + $0x6f0] sm:$0xff] }
 0x150   :  { %2713 = vmatpush1.bf16.msra.mxu0 %v4034_v22  ;;  %v3845_v22 = vcombine.high %v239_v13, %v243_v14  ;;  %v423_v13 = vld [vmem:[#allocation6 + $0x710] sm:$0xff] }
 0x151   :  { %2754 = vmatpush1.bf16.msra.mxu1 %v4162_v23  ;;  %2714 = vmatprep.subr.bf16.mxu0 %v4043_v24  ;;  %v3973_v23 = vcombine.high %v367_v15, %v371_v16  ;;  %v247_v24 = vld [vmem:[#allocation6 + $0x190] sm:$0xff]  ;;  %v4020_v16 = vcombine.low %v415_v5, %v419_v6 }
 0x152   :  { %2755 = vmatprep.subr.bf16.mxu1 %v4171_v25  ;;  %v251_v25 = vld [vmem:[#allocation6 + $0x1b0] sm:$0xff] }
 0x153   :  { %v3852_v36 = vcombine.low %v247_v24, %v251_v25  ;;  %v427_v14 = vld [vmem:[#allocation6 + $0x730] sm:$0xff] }
 0x154   :  { %2715 = vmatpush1.bf16.msra.mxu0 %v4042_v55  ;;  %v3853_v55 = vcombine.high %v247_v24, %v251_v25  ;;  %v431_v24 = vld [vmem:[#allocation6 + $0x750] sm:$0xff] }
 0x155   :  { %2756 = vmatpush1.bf16.msra.mxu1 %v4170_v30  ;;  %2716 = vmatprep.subr.bf16.mxu0 %v4051_v31  ;;  %v3981_v30 = vcombine.high %v375_v26, %v379_v27  ;;  %v255_v31 = vld [vmem:[#allocation6 + $0x1d0] sm:$0xff]  ;;  %v4028_v27 = vcombine.low %v423_v13, %v427_v14 }
 0x156   :  { %2757 = vmatprep.subr.bf16.mxu1 %v4179_v32  ;;  %v259_v32 = vld [vmem:[#allocation6 + $0x1f0] sm:$0xff] }
 0x157   :  { %v3860_v43 = vcombine.low %v255_v31, %v259_v32  ;;  %v435_v25 = vld [vmem:[#allocation6 + $0x770] sm:$0xff] }
 0x158   :  { %2717 = vmatpush1.bf16.msra.mxu0 %v4050_v38  ;;  %v3861_v38 = vcombine.high %v255_v31, %v259_v32  ;;  %v439_v31 = vld [vmem:[#allocation6 + $0x790] sm:$0xff] }
 0x159   :  { %2758 = vmatpush1.bf16.msra.mxu1 %v4178_v39  ;;  %2768 = vmatprep.subr.bf16.mxu0 %v3805_v40  ;;  %v3989_v39 = vcombine.high %v383_v34, %v387_v35  ;;  %v263_v40 = vld [vmem:[#allocation6 + $0x210] sm:$0xff]  ;;  %v4036_v35 = vcombine.low %v431_v24, %v435_v25 }
 0x15a   :  { %2809 = vmatprep.subr.bf16.mxu1 %v3933_v41  ;;  %v267_v41 = vld [vmem:[#allocation6 + $0x230] sm:$0xff] }
 0x15b   :  { %2719 = vmatmul.mubr.bf16.vlgmr.msra.gmra.mrb[8].mxu0 %v4794_v21  ;;  %v3868_v51 = vcombine.low %v263_v40, %v267_v41  ;;  %v443_v32 = vld [vmem:[#allocation6 + $0x7b0] sm:$0xff] }
 0x15c   :  { %2760 = vmatmul.mubr.bf16.vlgmr.msra.gmra.mrb[8].mxu1 %v4806_v33  ;;  %2769 = vmatpush1.bf16.msra.mxu0 %v3804_v45  ;;  %v3869_v45 = vcombine.high %v263_v40, %v267_v41  ;;  %v447_v40 = vld [vmem:[#allocation6 + $0x7d0] sm:$0xff] }
 0x15d   :  { %2810 = vmatpush1.bf16.msra.mxu1 %v3932_v46  ;;  %2770 = vmatprep.subr.bf16.mxu0 %v3813_v47  ;;  %v3997_v46 = vcombine.high %v391_v42, %v395_v20  ;;  %v271_v47 = vld [vmem:[#allocation6 + $0x250] sm:$0xff]  ;;  %v4044_v20 = vcombine.low %v439_v31, %v443_v32 }
 0x15e   :  { %2811 = vmatprep.subr.bf16.mxu1 %v3941_v48  ;;  %2800 = vmatprep.mubr.bf16.mxu0 %v4778_v59  ;;  %v275_v48 = vld [vmem:[#allocation6 + $0x270] sm:$0xff] }
 0x15f   :  { %2841 = vmatprep.mubr.bf16.mxu1 %v4782_v60  ;;  %v3876_v63 = vcombine.low %v271_v47, %v275_v48  ;;  %v451_v41 = vld [vmem:[#allocation6 + $0x7f0] sm:$0xff] }
 0x160   :  { %2771 = vmatpush1.bf16.msra.mxu0 %v3812_v53  ;;  %v3877_v53 = vcombine.high %v271_v47, %v275_v48  ;;  %v200_v47 = vld [vmem:[#allocation6 + $0x18] sm:$0xff] }
 0x161   :  { %2812 = vmatpush1.bf16.msra.mxu1 %v3940_v56  ;;  %2772 = vmatprep.subr.bf16.mxu0 %v3821_v57  ;;  %v4005_v56 = vcombine.high %v399_v49, %v403_v50  ;;  %v279_v57 = vld [vmem:[#allocation6 + $0x290] sm:$0xff]  ;;  %v204_v48 = vld [vmem:[#allocation6 + $0x38] sm:$0xff]  ;;  %v4052_v50 = vcombine.low %v447_v40, %v451_v41 }
 0x162   :  { %2813 = vmatprep.subr.bf16.mxu1 %v3949_v58  ;;  %v283_v58 = vld [vmem:[#allocation6 + $0x2b0] sm:$0xff] }
 0x163   :  { %v3884_v7 = vcombine.low %v279_v57, %v283_v58 }
 0x164   :  { %2773 = vmatpush1.bf16.msra.mxu0 %v3820_v1  ;;  %v3885_v1 = vcombine.high %v279_v57, %v283_v58  ;;  %v208_v57 = vld [vmem:[#allocation6 + $0x58] sm:$0xff] }
 0x165   :  { %2814 = vmatpush1.bf16.msra.mxu1 %v3948_v2  ;;  %2774 = vmatprep.subr.bf16.mxu0 %v3829_v3  ;;  %v4013_v2 = vcombine.high %v407_v61, %v411_v62  ;;  %v287_v3 = vld [vmem:[#allocation6 + $0x2d0] sm:$0xff]  ;;  %v212_v58 = vld [vmem:[#allocation6 + $0x78] sm:$0xff]  ;;  %v3806_v62 = vcombine.low %v200_v47, %v204_v48 }
 0x166   :  { %2815 = vmatprep.subr.bf16.mxu1 %v3957_v4  ;;  %v291_v4 = vld [vmem:[#allocation6 + $0x2f0] sm:$0xff] }
 0x167   :  { %v3892_v15 = vcombine.low %v287_v3, %v291_v4 }
 0x168   :  { %2775 = vmatpush1.bf16.msra.mxu0 %v3828_v9  ;;  %v3893_v9 = vcombine.high %v287_v3, %v291_v4  ;;  %v216_v3 = vld [vmem:[#allocation6 + $0x98] sm:$0xff] }
 0x169   :  { %2816 = vmatpush1.bf16.msra.mxu1 %v3956_v10  ;;  %2776 = vmatprep.subr.bf16.mxu0 %v3837_v11  ;;  %v4021_v10 = vcombine.high %v415_v5, %v419_v6  ;;  %v295_v11 = vld [vmem:[#allocation6 + $0x310] sm:$0xff]  ;;  %v220_v4 = vld [vmem:[#allocation6 + $0xb8] sm:$0xff]  ;;  %v3814_v6 = vcombine.low %v208_v57, %v212_v58 }
 0x16a   :  { %2817 = vmatprep.subr.bf16.mxu1 %v3965_v12  ;;  %v299_v12 = vld [vmem:[#allocation6 + $0x330] sm:$0xff] }
 0x16b   :  { %v3900_v26 = vcombine.low %v295_v11, %v299_v12 }
 0x16c   :  { %2777 = vmatpush1.bf16.msra.mxu0 %v3836_v18  ;;  %v3901_v18 = vcombine.high %v295_v11, %v299_v12  ;;  %v224_v11 = vld [vmem:[#allocation6 + $0xd8] sm:$0xff] }
 0x16d   :  { %2818 = vmatpush1.bf16.msra.mxu1 %v3964_v19  ;;  %2778 = vmatprep.subr.bf16.mxu0 %v3845_v22  ;;  %v4029_v19 = vcombine.high %v423_v13, %v427_v14  ;;  %v303_v22 = vld [vmem:[#allocation6 + $0x350] sm:$0xff]  ;;  %v228_v12 = vld [vmem:[#allocation6 + $0xf8] sm:$0xff]  ;;  %v3822_v14 = vcombine.low %v216_v3, %v220_v4 }
 0x16e   :  { %2819 = vmatprep.subr.bf16.mxu1 %v3973_v23  ;;  %v307_v23 = vld [vmem:[#allocation6 + $0x370] sm:$0xff] }
 0x16f   :  { %v3908_v34 = vcombine.low %v303_v22, %v307_v23 }
 0x170   :  { %2779 = vmatpush1.bf16.msra.mxu0 %v3844_v54  ;;  %v3909_v54 = vcombine.high %v303_v22, %v307_v23  ;;  %v232_v22 = vld [vmem:[#allocation6 + $0x118] sm:$0xff] }
 0x171   :  { %2820 = vmatpush1.bf16.msra.mxu1 %v3972_v28  ;;  %2780 = vmatprep.subr.bf16.mxu0 %v3853_v55  ;;  %v4037_v28 = vcombine.high %v431_v24, %v435_v25  ;;  %v311_v55 = vld [vmem:[#allocation6 + $0x390] sm:$0xff]  ;;  %v236_v23 = vld [vmem:[#allocation6 + $0x138] sm:$0xff]  ;;  %v3830_v25 = vcombine.low %v224_v11, %v228_v12 }
 0x172   :  { %2821 = vmatprep.subr.bf16.mxu1 %v3981_v30  ;;  %v315_v30 = vld [vmem:[#allocation6 + $0x3b0] sm:$0xff] }
 0x173   :  { %v3916_v42 = vcombine.low %v311_v55, %v315_v30 }
 0x174   :  { %2781 = vmatpush1.bf16.msra.mxu0 %v3852_v36  ;;  %v3917_v36 = vcombine.high %v311_v55, %v315_v30  ;;  %v244_v55 = vld [vmem:[#allocation6 + $0x178] sm:$0xff] }
 0x175   :  { %2822 = vmatpush1.bf16.msra.mxu1 %v3980_v37  ;;  %2782 = vmatprep.subr.bf16.mxu0 %v3861_v38  ;;  %v4045_v37 = vcombine.high %v439_v31, %v443_v32  ;;  %v319_v38 = vld [vmem:[#allocation6 + $0x3d0] sm:$0xff]  ;;  %v3838_v31 = vcombine.low %v232_v22, %v236_v23 }
 0x176   :  { %2823 = vmatprep.subr.bf16.mxu1 %v3989_v39  ;;  %v323_v39 = vld [vmem:[#allocation6 + $0x3f0] sm:$0xff] }
 0x177   :  { %v3924_v49 = vcombine.low %v319_v38, %v323_v39 }
 0x178   :  { %2783 = vmatpush1.bf16.msra.mxu0 %v3860_v43  ;;  %v3925_v43 = vcombine.high %v319_v38, %v323_v39  ;;  %v252_v38 = vld [vmem:[#allocation6 + $0x1b8] sm:$0xff] }
 0x179   :  { %2824 = vmatpush1.bf16.msra.mxu1 %v3988_v44  ;;  %2784 = vmatprep.subr.bf16.mxu0 %v3869_v45  ;;  %v4053_v44 = vcombine.high %v447_v40, %v451_v41  ;;  %v455_v45 = vld [vmem:[#allocation6 + $0x810] sm:$0xff] }
 0x17a   :  { %2825 = vmatprep.subr.bf16.mxu1 %v3997_v46  ;;  %v459_v46 = vld [vmem:[#allocation6 + $0x830] sm:$0xff] }
 0x17b   :  { %v4060_v61 = vcombine.low %v455_v45, %v459_v46 }
 0x17c   :  { %2785 = vmatpush1.bf16.msra.mxu0 %v3868_v51  ;;  %v4061_v51 = vcombine.high %v455_v45, %v459_v46 }
 0x17d   :  { %2826 = vmatpush1.bf16.msra.mxu1 %v3996_v52  ;;  %2786 = vmatprep.subr.bf16.mxu0 %v3877_v53  ;;  %v3807_v52 = vcombine.high %v200_v47, %v204_v48  ;;  %v463_v53 = vld [vmem:[#allocation6 + $0x850] sm:$0xff]  ;;  %v256_v47 = vld [vmem:[#allocation6 + $0x1d8] sm:$0xff] }
 0x17e   :  { %2827 = vmatprep.subr.bf16.mxu1 %v4005_v56  ;;  %v467_v56 = vld [vmem:[#allocation6 + $0x870] sm:$0xff]  ;;  %v260_v48 = vld [vmem:[#allocation6 + $0x1f8] sm:$0xff] }
 0x17f   :  { %v4068_v5 = vcombine.low %v463_v53, %v467_v56 }
 0x180   :  { %2787 = vmatpush1.bf16.msra.mxu0 %v3876_v63  ;;  %v4069_v63 = vcombine.high %v463_v53, %v467_v56 }
 0x181   :  { %2828 = vmatpush1.bf16.msra.mxu1 %v4004_v0  ;;  %2788 = vmatprep.subr.bf16.mxu0 %v3885_v1  ;;  %v3815_v0 = vcombine.high %v208_v57, %v212_v58  ;;  %v471_v1 = vld [vmem:[#allocation6 + $0x890] sm:$0xff] }
 0x182   :  { %2829 = vmatprep.subr.bf16.mxu1 %v4013_v2  ;;  %v475_v2 = vld [vmem:[#allocation6 + $0x8b0] sm:$0xff] }
 0x183   :  { %v4076_v13 = vcombine.low %v471_v1, %v475_v2 }
 0x184   :  { %2789 = vmatpush1.bf16.msra.mxu0 %v3884_v7  ;;  %v4077_v7 = vcombine.high %v471_v1, %v475_v2  ;;  %v523_v1 = vld [vmem:[#allocation6 + $0xa30] sm:$0xff]  ;;  %v264_v2 = vld [vmem:[#allocation6 + $0x218] sm:$0xff] }
 0x185   :  { %2830 = vmatpush1.bf16.msra.mxu1 %v4012_v8  ;;  %2790 = vmatprep.subr.bf16.mxu0 %v3893_v9  ;;  %v3823_v8 = vcombine.high %v216_v3, %v220_v4  ;;  %v479_v9 = vld [vmem:[#allocation6 + $0x8d0] sm:$0xff]  ;;  %v268_v3 = vld [vmem:[#allocation6 + $0x238] sm:$0xff] }
 0x186   :  { %2831 = vmatprep.subr.bf16.mxu1 %v4021_v10  ;;  %v483_v10 = vld [vmem:[#allocation6 + $0x8f0] sm:$0xff] }
 0x187   :  { %v4084_v24 = vcombine.low %v479_v9, %v483_v10 }
 0x188   :  { %2791 = vmatpush1.bf16.msra.mxu0 %v3892_v15  ;;  %v4085_v15 = vcombine.high %v479_v9, %v483_v10  ;;  %v531_v9 = vld [vmem:[#allocation6 + $0xa70] sm:$0xff]  ;;  %v272_v10 = vld [vmem:[#allocation6 + $0x258] sm:$0xff] }
 0x189   :  { %2832 = vmatpush1.bf16.msra.mxu1 %v4020_v16  ;;  %2792 = vmatprep.subr.bf16.mxu0 %v3901_v18  ;;  %v3831_v16 = vcombine.high %v224_v11, %v228_v12  ;;  %v487_v18 = vld [vmem:[#allocation6 + $0x910] sm:$0xff]  ;;  %v276_v11 = vld [vmem:[#allocation6 + $0x278] sm:$0xff] }
 0x18a   :  { %2833 = vmatprep.subr.bf16.mxu1 %v4029_v19  ;;  %v491_v19 = vld [vmem:[#allocation6 + $0x930] sm:$0xff] }
 0x18b   :  { %v4092_v30 = vcombine.low %v487_v18, %v491_v19 }
 0x18c   :  { %2793 = vmatpush1.bf16.msra.mxu0 %v3900_v26  ;;  %v4093_v26 = vcombine.high %v487_v18, %v491_v19  ;;  %v539_v18 = vld [vmem:[#allocation6 + $0xab0] sm:$0xff]  ;;  %v280_v19 = vld [vmem:[#allocation6 + $0x298] sm:$0xff] }
 0x18d   :  { %2834 = vmatpush1.bf16.msra.mxu1 %v4028_v27  ;;  %2794 = vmatprep.subr.bf16.mxu0 %v3909_v54  ;;  %v495_v27 = vld [vmem:[#allocation6 + $0x950] sm:$0xff] }
 0x18e   :  { %2835 = vmatprep.subr.bf16.mxu1 %v4037_v28  ;;  %v499_v54 = vld [vmem:[#allocation6 + $0x970] sm:$0xff]  ;;  %v240_v28 = vld [vmem:[#allocation6 + $0x158] sm:$0xff] }
 0x18f   :  { %v4101_v32 = vcombine.high %v495_v27, %v499_v54  ;;  %v4100_v39 = vcombine.low %v495_v27, %v499_v54  ;;  %v3846_v40 = vcombine.low %v240_v28, %v244_v55  ;;  %v547_v27 = vld [vmem:[#allocation6 + $0xaf0] sm:$0xff]  ;;  %v288_v54 = vld [vmem:[#allocation6 + $0x2d8] sm:$0xff] }
 0x190   :  { %2795 = vmatpush1.bf16.msra.mxu0 %v3908_v34  ;;  %v3847_v34 = vcombine.high %v240_v28, %v244_v55  ;;  %v292_v28 = vld [vmem:[#allocation6 + $0x2f8] sm:$0xff] }
 0x191   :  { %2836 = vmatpush1.bf16.msra.mxu1 %v4036_v35  ;;  %2796 = vmatprep.subr.bf16.mxu0 %v3917_v36  ;;  %v503_v35 = vld [vmem:[#allocation6 + $0x990] sm:$0xff] }
 0x192   :  { %2837 = vmatprep.subr.bf16.mxu1 %v4045_v37  ;;  %v507_v36 = vld [vmem:[#allocation6 + $0x9b0] sm:$0xff]  ;;  %v248_v37 = vld [vmem:[#allocation6 + $0x198] sm:$0xff] }
 0x193   :  { %v4109_v41 = vcombine.high %v503_v35, %v507_v36  ;;  %v3854_v58 = vcombine.low %v248_v37, %v252_v38 }
 0x194   :  { %2797 = vmatpush1.bf16.msra.mxu0 %v3916_v42 }
 0x195   :  { %2838 = vmatpush1.bf16.msra.mxu1 %v4044_v20  ;;  %2798 = vmatprep.subr.bf16.mxu0 %v3925_v43  ;;  %v3855_v20 = vcombine.high %v248_v37, %v252_v38  ;;  %v511_v43 = vld [vmem:[#allocation6 + $0x9d0] sm:$0xff]  ;;  %v300_v37 = vld [vmem:[#allocation6 + $0x338] sm:$0xff] }
 0x196   :  { %2839 = vmatprep.subr.bf16.mxu1 %v4053_v44  ;;  %v515_v44 = vld [vmem:[#allocation6 + $0x9f0] sm:$0xff] }
 0x197   :  { %v4116_v4 = vcombine.low %v511_v43, %v515_v44 }
 0x198   :  { %2799 = vmatpush1.bf16.msra.mxu0 %v3924_v49 }
 0x199   :  { %2840 = vmatpush1.bf16.msra.mxu1 %v4052_v50  ;;  %2850 = vmatprep.subr.bf16.mxu0 %v4061_v51 }
 0x19a   :  { %2891 = vmatprep.subr.bf16.mxu1 %v3807_v52  ;;  %v4108_v52 = vcombine.low %v503_v35, %v507_v36  ;;  %v555_v35 = vld [vmem:[#allocation6 + $0xb30] sm:$0xff]  ;;  %v296_v36 = vld [vmem:[#allocation6 + $0x318] sm:$0xff] }
 0x19b   :  { %2801 = vmatmul.mubr.bf16.vlgmr.msra.gmra.mrb[12].mxu0 %v4788_v17 }
 0x19c   :  { %2842 = vmatmul.mubr.bf16.vlgmr.msra.gmra.mrb[12].mxu1 %v4794_v21  ;;  %2851 = vmatpush1.bf16.msra.mxu0 %v4060_v61  ;;  %v4117_v61 = vcombine.high %v511_v43, %v515_v44  ;;  %v304_v43 = vld [vmem:[#allocation6 + $0x358] sm:$0xff] }
 0x19d   :  { %2892 = vmatpush1.bf16.msra.mxu1 %v3806_v62  ;;  %2852 = vmatprep.subr.bf16.mxu0 %v4069_v63  ;;  %v3863_v63 = vcombine.high %v256_v47, %v260_v48  ;;  %v308_v44 = vld [vmem:[#allocation6 + $0x378] sm:$0xff] }
 0x19e   :  { %2893 = vmatprep.subr.bf16.mxu1 %v3815_v0  ;;  %2882 = vmatprep.mubr.bf16.mxu0 %v4798_v29  ;;  %v519_v0 = vld [vmem:[#allocation6 + $0xa10] sm:$0xff] }
 0x19f   :  { %2923 = vmatprep.mubr.bf16.mxu1 %v4778_v59  ;;  %v3839_v59 = vcombine.high %v232_v22, %v236_v23  ;;  %v4124_v12 = vcombine.low %v519_v0, %v523_v1  ;;  %v284_v22 = vld [vmem:[#allocation6 + $0x2b8] sm:$0xff] }
 0x1a0   :  { %2853 = vmatpush1.bf16.msra.mxu0 %v4068_v5  ;;  %v3862_v5 = vcombine.low %v256_v47, %v260_v48  ;;  %v3911_v48 = vcombine.high %v304_v43, %v308_v44 }
 0x1a1   :  { %2894 = vmatpush1.bf16.msra.mxu1 %v3814_v6  ;;  %2854 = vmatprep.subr.bf16.mxu0 %v4077_v7  ;;  %v4125_v6 = vcombine.high %v519_v0, %v523_v1  ;;  %v3871_v7 = vcombine.high %v264_v2, %v268_v3  ;;  %v579_v0 = vld [vmem:[#allocation6 + $0xbf0] sm:$0xff]  ;;  %v320_v1 = vld [vmem:[#allocation6 + $0x3d8] sm:$0xff] }
 0x1a2   :  { %2895 = vmatprep.subr.bf16.mxu1 %v3823_v8  ;;  %v527_v8 = vld [vmem:[#allocation6 + $0xa50] sm:$0xff] }
 0x1a3   :  { %v4132_v23 = vcombine.low %v527_v8, %v531_v9 }
 0x1a4   :  { %2855 = vmatpush1.bf16.msra.mxu0 %v4076_v13  ;;  %v3870_v13 = vcombine.low %v264_v2, %v268_v3  ;;  %v324_v2 = vld [vmem:[#allocation6 + $0x3f8] sm:$0xff] }
 0x1a5   :  { %2896 = vmatpush1.bf16.msra.mxu1 %v3822_v14  ;;  %2856 = vmatprep.subr.bf16.mxu0 %v4085_v15  ;;  %v4133_v14 = vcombine.high %v527_v8, %v531_v9  ;;  %v3879_v15 = vcombine.high %v272_v10, %v276_v11  ;;  %v332_v8 = vld [vmem:[#allocation6 + $0x438] sm:$0xff] }
 0x1a6   :  { %2897 = vmatprep.subr.bf16.mxu1 %v3831_v16  ;;  %v535_v16 = vld [vmem:[#allocation6 + $0xa90] sm:$0xff]  ;;  %v456_v9 = vld [vmem:[#allocation6 + $0x818] sm:$0xff] }
 0x1a7   :  { %v4140_v55 = vcombine.low %v535_v16, %v539_v18 }
 0x1a8   :  { %2857 = vmatpush1.bf16.msra.mxu0 %v4084_v24  ;;  %v3878_v24 = vcombine.low %v272_v10, %v276_v11  ;;  %v460_v10 = vld [vmem:[#allocation6 + $0x838] sm:$0xff] }
 0x1a9   :  { %2898 = vmatpush1.bf16.msra.mxu1 %v3830_v25  ;;  %2858 = vmatprep.subr.bf16.mxu0 %v4093_v26  ;;  %v4141_v25 = vcombine.high %v535_v16, %v539_v18  ;;  %v3887_v26 = vcombine.high %v280_v19, %v284_v22  ;;  %v340_v16 = vld [vmem:[#allocation6 + $0x478] sm:$0xff] }
 0x1aa   :  { %2899 = vmatprep.subr.bf16.mxu1 %v3839_v59  ;;  %v543_v59 = vld [vmem:[#allocation6 + $0xad0] sm:$0xff]  ;;  %v464_v18 = vld [vmem:[#allocation6 + $0x858] sm:$0xff] }
 0x1ab   :  { %v4148_v38 = vcombine.low %v543_v59, %v547_v27 }
 0x1ac   :  { %2859 = vmatpush1.bf16.msra.mxu0 %v4092_v30  ;;  %v3886_v30 = vcombine.low %v280_v19, %v284_v22  ;;  %v468_v19 = vld [vmem:[#allocation6 + $0x878] sm:$0xff] }
 0x1ad   :  { %2900 = vmatpush1.bf16.msra.mxu1 %v3838_v31  ;;  %2860 = vmatprep.subr.bf16.mxu0 %v4101_v32  ;;  %v4149_v31 = vcombine.high %v543_v59, %v547_v27  ;;  %v3895_v32 = vcombine.high %v288_v54, %v292_v28  ;;  %v348_v59 = vld [vmem:[#allocation6 + $0x4b8] sm:$0xff] }
 0x1ae   :  { %v2556_v42 = vpop.f32.mrb[0].mxu0  ;;  %2901 = vmatprep.subr.bf16.mxu1 %v3847_v34  ;;  %v551_v34 = vld [vmem:[#allocation6 + $0xb10] sm:$0xff]  ;;  %v472_v27 = vld [vmem:[#allocation6 + $0x898] sm:$0xff] }
 0x1af   :  { %v2597_v45 = vpop.f32.mrb[0].mxu1  ;;  %v2558_v46 = vpop.f32.mrb[1].mxu0 }
 0x1b0   :  { %v4820_v49 = vadd.f32 %v2597_v45, %v2556_v42  ;;  %v2599_v50 = vpop.f32.mrb[1].mxu1  ;;  %v2560_v51 = vpop.f32.mrb[2].mxu0  ;;  %2861 = vmatpush1.bf16.msra.mxu0 %v4100_v39  ;;  %v3894_v39 = vcombine.low %v288_v54, %v292_v28  ;;  %v559_v42 = vld [vmem:[#allocation6 + $0xb50] sm:$0xff]  ;;  %v4156_v45 = vcombine.low %v551_v34, %v555_v35  ;;  %v476_v54 = vld [vmem:[#allocation6 + $0x8b8] sm:$0xff] }
 0x1b1   :  { %v4822_v53 = vadd.f32 %v2599_v50, %v2558_v46  ;;  %v2601_v56 = vpop.f32.mrb[2].mxu1  ;;  %2902 = vmatpush1.bf16.msra.mxu1 %v3846_v40  ;;  %v2561_v57 = vpop.f32.mrb[3].mxu0  ;;  %2862 = vmatprep.subr.bf16.mxu0 %v4109_v41  ;;  %v4157_v40 = vcombine.high %v551_v34, %v555_v35  ;;  %v3903_v41 = vcombine.high %v296_v36, %v300_v37  ;;  %v567_v50 = vld [vmem:[#allocation6 + $0xb90] sm:$0xff]  ;;  %v356_v34 = vld [vmem:[#allocation6 + $0x4f8] sm:$0xff] }
 0x1b2   :  { %v2602_v62 = vpop.f32.mrb[3].mxu1  ;;  %2903 = vmatprep.subr.bf16.mxu1 %v3855_v20  ;;  %v563_v20 = vld [vmem:[#allocation6 + $0xb70] sm:$0xff]  ;;  %v3902_v46 = vcombine.low %v296_v36, %v300_v37  ;;  %v316_v56 = vld [vmem:[#allocation6 + $0x3b8] sm:$0xff] }
 0x1b3   :  { %v4165_v47 = vcombine.high %v559_v42, %v563_v20  ;;  %v571_v51 = vld [vmem:[#allocation6 + $0xbb0] sm:$0xff]  ;;  %v4164_v57 = vcombine.low %v559_v42, %v563_v20  ;;  %v480_v35 = vld [vmem:[#allocation6 + $0x8d8] sm:$0xff] }
 0x1b4   :  { %2863 = vmatpush1.bf16.msra.mxu0 %v4108_v52  ;;  %v312_v52 = vld [vmem:[#allocation6 + $0x398] sm:$0xff]  ;;  %v4172_v3 = vcombine.low %v567_v50, %v571_v51 }
 0x1b5   :  { %2904 = vmatpush1.bf16.msra.mxu1 %v3854_v58  ;;  %2864 = vmatprep.subr.bf16.mxu0 %v4117_v61  ;;  %v3910_v58 = vcombine.low %v304_v43, %v308_v44  ;;  %v4173_v61 = vcombine.high %v567_v50, %v571_v51  ;;  %v3919_v62 = vcombine.high %v312_v52, %v316_v56  ;;  %v484_v36 = vld [vmem:[#allocation6 + $0x8f8] sm:$0xff] }
 0x1b6   :  { %2905 = vmatprep.subr.bf16.mxu1 %v3863_v63  ;;  %v575_v63 = vld [vmem:[#allocation6 + $0xbd0] sm:$0xff]  ;;  %v488_v42 = vld [vmem:[#allocation6 + $0x918] sm:$0xff] }
 0x1b7   :  { %v4180_v11 = vcombine.low %v575_v63, %v579_v0  ;;  %v492_v20 = vld [vmem:[#allocation6 + $0x938] sm:$0xff] }
 0x1b8   :  { %2865 = vmatpush1.bf16.msra.mxu0 %v4116_v4  ;;  %v3918_v4 = vcombine.low %v312_v52, %v316_v56  ;;  %v4094_v51 = vcombine.low %v488_v42, %v492_v20 }
 0x1b9   :  { %2906 = vmatpush1.bf16.msra.mxu1 %v3862_v5  ;;  %2866 = vmatprep.subr.bf16.mxu0 %v4125_v6  ;;  %v4181_v5 = vcombine.high %v575_v63, %v579_v0  ;;  %v3927_v6 = vcombine.high %v320_v1, %v324_v2 }
 0x1ba   :  { %2907 = vmatprep.subr.bf16.mxu1 %v3871_v7  ;;  %v328_v7 = vld [vmem:[#allocation6 + $0x418] sm:$0xff] }
 0x1bb   :  { %v3934_v22 = vcombine.low %v328_v7, %v332_v8 }
 0x1bc   :  { %2867 = vmatpush1.bf16.msra.mxu0 %v4124_v12  ;;  %v3926_v12 = vcombine.low %v320_v1, %v324_v2 }
 0x1bd   :  { %2908 = vmatpush1.bf16.msra.mxu1 %v3870_v13  ;;  %2868 = vmatprep.subr.bf16.mxu0 %v4133_v14  ;;  %v3935_v13 = vcombine.high %v328_v7, %v332_v8  ;;  %v4063_v14 = vcombine.high %v456_v9, %v460_v10 }
 0x1be   :  { %2909 = vmatprep.subr.bf16.mxu1 %v3879_v15  ;;  %v336_v15 = vld [vmem:[#allocation6 + $0x458] sm:$0xff] }
 0x1bf   :  { %v3942_v28 = vcombine.low %v336_v15, %v340_v16 }
 0x1c0   :  { %2869 = vmatpush1.bf16.msra.mxu0 %v4132_v23  ;;  %v4062_v23 = vcombine.low %v456_v9, %v460_v10  ;;  %v512_v9 = vld [vmem:[#allocation6 + $0x9d8] sm:$0xff] }
 0x1c1   :  { %2910 = vmatpush1.bf16.msra.mxu1 %v3878_v24  ;;  %2870 = vmatprep.subr.bf16.mxu0 %v4141_v25  ;;  %v3943_v24 = vcombine.high %v336_v15, %v340_v16  ;;  %v4071_v25 = vcombine.high %v464_v18, %v468_v19  ;;  %v516_v10 = vld [vmem:[#allocation6 + $0x9f8] sm:$0xff] }
 0x1c2   :  { %2911 = vmatprep.subr.bf16.mxu1 %v3887_v26  ;;  %v344_v26 = vld [vmem:[#allocation6 + $0x498] sm:$0xff] }
 0x1c3   :  { %v3950_v37 = vcombine.low %v344_v26, %v348_v59 }
 0x1c4   :  { %2871 = vmatpush1.bf16.msra.mxu0 %v4140_v55  ;;  %v4070_v55 = vcombine.low %v464_v18, %v468_v19 }
 0x1c5   :  { %2912 = vmatpush1.bf16.msra.mxu1 %v3886_v30  ;;  %2872 = vmatprep.subr.bf16.mxu0 %v4149_v31  ;;  %v3951_v30 = vcombine.high %v344_v26, %v348_v59  ;;  %v4079_v31 = vcombine.high %v472_v27, %v476_v54  ;;  %v524_v26 = vld [vmem:[#allocation6 + $0xa38] sm:$0xff]  ;;  %v4118_v59 = vcombine.low %v512_v9, %v516_v10 }
 0x1c6   :  { %2913 = vmatprep.subr.bf16.mxu1 %v3895_v32  ;;  %v352_v32 = vld [vmem:[#allocation6 + $0x4d8] sm:$0xff] }
 0x1c7   :  { %v3958_v43 = vcombine.low %v352_v32, %v356_v34 }
 0x1c8   :  { %2873 = vmatpush1.bf16.msra.mxu0 %v4148_v38  ;;  %v3959_v38 = vcombine.high %v352_v32, %v356_v34 }
 0x1c9   :  { %2914 = vmatpush1.bf16.msra.mxu1 %v3894_v39  ;;  %2874 = vmatprep.subr.bf16.mxu0 %v4157_v40  ;;  %v4087_v39 = vcombine.high %v480_v35, %v484_v36  ;;  %v360_v40 = vld [vmem:[#allocation6 + $0x518] sm:$0xff] }
 0x1ca   :  { %2915 = vmatprep.subr.bf16.mxu1 %v3903_v41  ;;  %v364_v41 = vld [vmem:[#allocation6 + $0x538] sm:$0xff] }
 0x1cb   :  { %v3967_v44 = vcombine.high %v360_v40, %v364_v41  ;;  %v3966_v50 = vcombine.low %v360_v40, %v364_v41 }
 0x1cc   :  { %2875 = vmatpush1.bf16.msra.mxu0 %v4156_v45  ;;  %v368_v45 = vld [vmem:[#allocation6 + $0x558] sm:$0xff] }
 0x1cd   :  { %2916 = vmatpush1.bf16.msra.mxu1 %v3902_v46  ;;  %2876 = vmatprep.subr.bf16.mxu0 %v4165_v47  ;;  %v372_v46 = vld [vmem:[#allocation6 + $0x578] sm:$0xff] }
 0x1ce   :  { %2917 = vmatprep.subr.bf16.mxu1 %v3911_v48  ;;  %v496_v47 = vld [vmem:[#allocation6 + $0x958] sm:$0xff]  ;;  %v3975_v52 = vcombine.high %v368_v45, %v372_v46  ;;  %v3974_v63 = vcombine.low %v368_v45, %v372_v46 }
 0x1cf   :  { %v500_v48 = vld [vmem:[#allocation6 + $0x978] sm:$0xff] }
 0x1d0   :  { %2877 = vmatpush1.bf16.msra.mxu0 %v4164_v57  ;;  %v4103_v56 = vcombine.high %v496_v47, %v500_v48  ;;  %v376_v57 = vld [vmem:[#allocation6 + $0x598] sm:$0xff]  ;;  %v4102_v0 = vcombine.low %v496_v47, %v500_v48 }
 0x1d1   :  { %2918 = vmatpush1.bf16.msra.mxu1 %v3910_v58  ;;  %2878 = vmatprep.subr.bf16.mxu0 %v4173_v61  ;;  %v380_v58 = vld [vmem:[#allocation6 + $0x5b8] sm:$0xff] }
 0x1d2   :  { %2919 = vmatprep.subr.bf16.mxu1 %v3919_v62  ;;  %v504_v61 = vld [vmem:[#allocation6 + $0x998] sm:$0xff]  ;;  %v3983_v1 = vcombine.high %v376_v57, %v380_v58 }
 0x1d3   :  { %v508_v62 = vld [vmem:[#allocation6 + $0x9b8] sm:$0xff] }
 0x1d4   :  { %2879 = vmatpush1.bf16.msra.mxu0 %v4172_v3  ;;  %v4111_v3 = vcombine.high %v504_v61, %v508_v62  ;;  %v4110_v18 = vcombine.low %v504_v61, %v508_v62 }
 0x1d5   :  { %2920 = vmatpush1.bf16.msra.mxu1 %v3918_v4  ;;  %2880 = vmatprep.subr.bf16.mxu0 %v4181_v5  ;;  %v384_v4 = vld [vmem:[#allocation6 + $0x5d8] sm:$0xff] }
 0x1d6   :  { %2921 = vmatprep.subr.bf16.mxu1 %v3927_v6  ;;  %v388_v5 = vld [vmem:[#allocation6 + $0x5f8] sm:$0xff] }
 0x1d8   :  { %2881 = vmatpush1.bf16.msra.mxu0 %v4180_v11 }
 0x1d9   :  { %2922 = vmatpush1.bf16.msra.mxu1 %v3926_v12  ;;  %2932 = vmatprep.subr.bf16.mxu0 %v3935_v13 }
 0x1da   :  { %2973 = vmatprep.subr.bf16.mxu1 %v4063_v14  ;;  %v3982_v14 = vcombine.low %v376_v57, %v380_v58 }
 0x1db   :  { %2883 = vmatmul.mubr.bf16.vlgmr.msra.gmra.mrb[16].mxu0 %v4806_v33 }
 0x1dc   :  { %2924 = vmatmul.mubr.bf16.vlgmr.msra.gmra.mrb[16].mxu1 %v4788_v17  ;;  %2933 = vmatpush1.bf16.msra.mxu0 %v3934_v22  ;;  %v4078_v17 = vcombine.low %v472_v27, %v476_v54  ;;  %v4119_v22 = vcombine.high %v512_v9, %v516_v10  ;;  %v440_v10 = vld [vmem:[#allocation6 + $0x798] sm:$0xff] }
 0x1dd   :  { %2974 = vmatpush1.bf16.msra.mxu1 %v4062_v23  ;;  %2934 = vmatprep.subr.bf16.mxu0 %v3943_v24  ;;  %v392_v23 = vld [vmem:[#allocation6 + $0x618] sm:$0xff] }
 0x1de   :  { %2975 = vmatprep.subr.bf16.mxu1 %v4071_v25  ;;  %2964 = vmatprep.mubr.bf16.mxu0 %v4782_v60  ;;  %v4086_v60 = vcombine.low %v480_v35, %v484_v36  ;;  %v396_v24 = vld [vmem:[#allocation6 + $0x638] sm:$0xff] }
 0x1df   :  { %3005 = vmatprep.mubr.bf16.mxu1 %v4798_v29  ;;  %v4095_v29 = vcombine.high %v488_v42, %v492_v20  ;;  %v520_v25 = vld [vmem:[#allocation6 + $0xa18] sm:$0xff]  ;;  %v3999_v27 = vcombine.high %v392_v23, %v396_v24  ;;  %v3998_v32 = vcombine.low %v392_v23, %v396_v24 }
 0x1e0   :  { %2935 = vmatpush1.bf16.msra.mxu0 %v3942_v28  ;;  %v4127_v54 = vcombine.high %v520_v25, %v524_v26  ;;  %v400_v28 = vld [vmem:[#allocation6 + $0x658] sm:$0xff]  ;;  %v4126_v34 = vcombine.low %v520_v25, %v524_v26 }
 0x1e1   :  { %2976 = vmatpush1.bf16.msra.mxu1 %v4070_v55  ;;  %2936 = vmatprep.subr.bf16.mxu0 %v3951_v30  ;;  %v404_v55 = vld [vmem:[#allocation6 + $0x678] sm:$0xff] }
 0x1e2   :  { %2977 = vmatprep.subr.bf16.mxu1 %v4079_v31  ;;  %v528_v30 = vld [vmem:[#allocation6 + $0xa58] sm:$0xff]  ;;  %v4007_v35 = vcombine.high %v400_v28, %v404_v55  ;;  %v4006_v40 = vcombine.low %v400_v28, %v404_v55 }
 0x1e3   :  { %v532_v31 = vld [vmem:[#allocation6 + $0xa78] sm:$0xff] }
 0x1e4   :  { %2937 = vmatpush1.bf16.msra.mxu0 %v3950_v37  ;;  %v4135_v36 = vcombine.high %v528_v30, %v532_v31  ;;  %v408_v37 = vld [vmem:[#allocation6 + $0x698] sm:$0xff]  ;;  %v4134_v41 = vcombine.low %v528_v30, %v532_v31 }
 0x1e5   :  { %2978 = vmatpush1.bf16.msra.mxu1 %v4078_v17  ;;  %2938 = vmatprep.subr.bf16.mxu0 %v3959_v38  ;;  %v412_v17 = vld [vmem:[#allocation6 + $0x6b8] sm:$0xff] }
 0x1e6   :  { %2979 = vmatprep.subr.bf16.mxu1 %v4087_v39  ;;  %v536_v38 = vld [vmem:[#allocation6 + $0xa98] sm:$0xff]  ;;  %v4015_v42 = vcombine.high %v408_v37, %v412_v17  ;;  %v4014_v45 = vcombine.low %v408_v37, %v412_v17  ;;  %v4361_v37 = vld [vmem:[#allocation9] sm:$0xff]  }
 0x1e7   :  { %v540_v39 = vld [vmem:[#allocation6 + $0xab8] sm:$0xff]  ;;  %v4362_v17 = vld [vmem:[#allocation9 + $0x80] sm:$0xff]  }
 0x1e8   :  { %2939 = vmatpush1.bf16.msra.mxu0 %v3958_v43  ;;  %v4143_v20 = vcombine.high %v536_v38, %v540_v39  ;;  %v416_v43 = vld [vmem:[#allocation6 + $0x6d8] sm:$0xff]  ;;  %v4142_v46 = vcombine.low %v536_v38, %v540_v39  ;;  %v4363_v38 = vld [vmem:[#allocation9 + $0x48] sm:$0xff]  }
 0x1e9   :  { %2980 = vmatpush1.bf16.msra.mxu1 %v4086_v60  ;;  %2940 = vmatprep.subr.bf16.mxu0 %v3967_v44  ;;  %v420_v60 = vld [vmem:[#allocation6 + $0x6f8] sm:$0xff]  ;;  %v4364_v39 = vld [vmem:[#allocation9 + $0xc8] sm:$0xff]  }
 0x1ea   :  { %2981 = vmatprep.subr.bf16.mxu1 %v4095_v29  ;;  %v544_v44 = vld [vmem:[#allocation6 + $0xad8] sm:$0xff]  ;;  %v4023_v47 = vcombine.high %v416_v43, %v420_v60  ;;  %v4022_v57 = vcombine.low %v416_v43, %v420_v60 }
 0x1eb   :  { %v548_v29 = vld [vmem:[#allocation6 + $0xaf8] sm:$0xff] }
 0x1ec   :  { %2941 = vmatpush1.bf16.msra.mxu0 %v3966_v50  ;;  %v4151_v48 = vcombine.high %v544_v44, %v548_v29  ;;  %v424_v50 = vld [vmem:[#allocation6 + $0x718] sm:$0xff]  ;;  %v4150_v58 = vcombine.low %v544_v44, %v548_v29  ;;  %v4371_v44 = vld [vmem:[#allocation9 + $0x58] sm:$0xff]  }
 0x1ed   :  { %2982 = vmatpush1.bf16.msra.mxu1 %v4094_v51  ;;  %2942 = vmatprep.subr.bf16.mxu0 %v3975_v52  ;;  %v428_v51 = vld [vmem:[#allocation6 + $0x738] sm:$0xff]  ;;  %v4372_v29 = vld [vmem:[#allocation9 + $0xd8] sm:$0xff]  }
 0x1ee   :  { %v2638_v2 = vpop.f32.mrb[4].mxu0  ;;  %2983 = vmatprep.subr.bf16.mxu1 %v4103_v56  ;;  %v552_v52 = vld [vmem:[#allocation6 + $0xb18] sm:$0xff]  ;;  %v4031_v61 = vcombine.high %v424_v50, %v428_v51 }
 0x1ef   :  { %v4829_v6 = vadd.f32 %v2638_v2, %v4820_v49  ;;  %v4831_v7 = vpop.f32.mrb[4].mxu1  ;;  %v2640_v8 = vpop.f32.mrb[5].mxu0  ;;  %v3991_v49 = vcombine.high %v384_v4, %v388_v5  ;;  %v556_v56 = vld [vmem:[#allocation6 + $0xb38] sm:$0xff] }
 0x1f0   :  { %v4834_v11 = vadd.f32 %v2640_v8, %v4822_v53  ;;  %v4836_v12 = vpop.f32.mrb[5].mxu1  ;;  %v2642_v13 = vpop.f32.mrb[6].mxu0  ;;  %2943 = vmatpush1.bf16.msra.mxu0 %v3974_v63  ;;  %v3990_v53 = vcombine.low %v384_v4, %v388_v5  ;;  %v4159_v62 = vcombine.high %v552_v52, %v556_v56  ;;  %v432_v63 = vld [vmem:[#allocation6 + $0x758] sm:$0xff]  ;;  %v4030_v4 = vcombine.low %v424_v50, %v428_v51  ;;  %v4379_v50 = vld [vmem:[#allocation9 + $0x68] sm:$0xff]  }
 0x1f1   :  { %v2683_v15 = vpop.f32.mrb[6].mxu1  ;;  %2984 = vmatpush1.bf16.msra.mxu1 %v4102_v0  ;;  %v2643_v16 = vpop.f32.mrb[7].mxu0  ;;  %2944 = vmatprep.subr.bf16.mxu0 %v3983_v1  ;;  %v436_v0 = vld [vmem:[#allocation6 + $0x778] sm:$0xff]  ;;  %v138_v1 = vlaneseq  ;;  %v4158_v5 = vcombine.low %v552_v52, %v556_v56  ;;  %v4380_v51 = vld [vmem:[#allocation9 + $0xe8] sm:$0xff]  }
 0x1f2   :  { %v2684_v19 = vpop.f32.mrb[7].mxu1  ;;  %2985 = vmatprep.subr.bf16.mxu1 %v4111_v3  ;;  %v560_v2 = vld [vmem:[#allocation6 + $0xb58] sm:$0xff]  ;;  %v4039_v8 = vcombine.high %v432_v63, %v436_v0  ;;  %v4381_v56 = vld [vmem:[#allocation9 + $0x28] sm:$0xff]  }
 0x1f3   :  { %v564_v3 = vld [vmem:[#allocation6 + $0xb78] sm:$0xff] }
 0x1f4   :  { %2945 = vmatpush1.bf16.msra.mxu0 %v3982_v14  ;;  %v4167_v9 = vcombine.high %v560_v2, %v564_v3  ;;  %v444_v13 = vld [vmem:[#allocation6 + $0x7b8] sm:$0xff]  ;;  %v4838_v14 = vshrl.u32 %v138_v1, 7 }
 0x1f5   :  { %2986 = vmatpush1.bf16.msra.mxu1 %v4110_v18  ;;  %2946 = vmatprep.subr.bf16.mxu0 %v3991_v49  ;;  %v568_v15 = vld [vmem:[#allocation6 + $0xb98] sm:$0xff]  ;;  %v4038_v18 = vcombine.low %v432_v63, %v436_v0  ;;  %v4166_v49 = vcombine.low %v560_v2, %v564_v3  ;;  %v4047_v19 = vcombine.high %v440_v10, %v444_v13 }
 0x1f6   :  { %2987 = vmatprep.subr.bf16.mxu1 %v4119_v22  ;;  %v572_v16 = vld [vmem:[#allocation6 + $0xbb8] sm:$0xff]  ;;  %v144_v25 = vsub.s32 1, %v4838_v14  ;;  %v152_v52 = vsub.s32 3, %v4838_v14  ;;  %v148_v63 = vsub.s32 2, %v4838_v14 }
 0x1f7   :  { %v4175_v22 = vcombine.high %v568_v15, %v572_v16  ;;  %v448_v23 = vld [vmem:[#allocation6 + $0x7d8] sm:$0xff] }
 0x1f8   :  { %2947 = vmatpush1.bf16.msra.mxu0 %v3990_v53  ;;  %v452_v24 = vld [vmem:[#allocation6 + $0x7f8] sm:$0xff] }
 0x1f9   :  { %2988 = vmatpush1.bf16.msra.mxu1 %v4118_v59  ;;  %2948 = vmatprep.subr.bf16.mxu0 %v3999_v27  ;;  %v576_v26 = vld [vmem:[#allocation6 + $0xbd8] sm:$0xff]  ;;  %v4841_v59 = vld [vmem:[#allocation8] sm:$0xff]  ;;  %v4046_v27 = vcombine.low %v440_v10, %v444_v13  ;;  %v4055_v28 = vcombine.high %v448_v23, %v452_v24  ;;  %v4054_v31 = vcombine.low %v448_v23, %v452_v24 }
 0x1fa   :  { %2989 = vmatprep.subr.bf16.mxu1 %v4127_v54  ;;  %v580_v53 = vld [vmem:[#allocation6 + $0xbf8] sm:$0xff]  ;;  %v4174_v54 = vcombine.low %v568_v15, %v572_v16  ;;  %v145_v30 = vrot.slane %v4841_v59, %v144_v25  ;;  %v4389_v25 = vld [vmem:[#allocation9 + $0x38] sm:$0xff]  }
 0x1fb   :  { %v4183_v55 = vcombine.high %v576_v26, %v580_v53  ;;  %v4369_v43 = vld [vmem:[#allocation9 + $0x10] sm:$0xff]  }
 0x1fc   :  { %2949 = vmatpush1.bf16.msra.mxu0 %v3998_v32  ;;  %v4182_v32 = vcombine.low %v576_v26, %v580_v53  ;;  %v4370_v60 = vld [vmem:[#allocation9 + $0x90] sm:$0xff]   ;;  %v4390_v53 = vld [vmem:[#allocation9 + $0xb8] sm:$0xff]  }
 0x1fd   :  { %2990 = vmatpush1.bf16.msra.mxu1 %v4126_v34  ;;  %2950 = vmatprep.subr.bf16.mxu0 %v4007_v35  ;;  %v4359_v34 = vld [vmem:[#allocation9 + $0x40] sm:$0xff]   ;;  %v4384_v0 = vld [vmem:[#allocation9 + $0xf0] sm:$0xff]  }
 0x1fe   :  { %2991 = vmatprep.subr.bf16.mxu1 %v4135_v36  ;;  %v4360_v35 = vld [vmem:[#allocation9 + $0xc0] sm:$0xff]   ;;  %v3015_v36 = vadd.f32 %v4834_v11, %v145_v30  ;;  %v4368_v11 = vld [vmem:[#allocation9 + $0xd0] sm:$0xff]  }
 0x1ff   :  { %v4385_v10 = vld [vmem:[#allocation9 + $0x30] sm:$0xff]   ;;  %v4392_v30 = vld [vmem:[#allocation9 + $0x100] sm:$0xff]  }
 0x200   :  { %2951 = vmatpush1.bf16.msra.mxu0 %v4006_v40  ;;  %v3042_v40 = vpack.c.bf16 %v3015_v36, %v3015_v36  ;;  %v4409_v36 = vld [vmem:[#allocation9 + $0x1c8] sm:$0xff]  }
 0x201   :  { %2992 = vmatpush1.bf16.msra.mxu1 %v4134_v41  ;;  %2952 = vmatprep.subr.bf16.mxu0 %v4015_v42  ;;  %v4365_v41 = vld [vmem:[#allocation9 + $0x8] sm:$0xff]  }
 0x202   :  { %2993 = vmatprep.subr.bf16.mxu1 %v4143_v20  ;;  %v4366_v42 = vld [vmem:[#allocation9 + $0x88] sm:$0xff]   ;;  %v4367_v20 = vld [vmem:[#allocation9 + $0x50] sm:$0xff]  }
 0x204   :  { %2953 = vmatpush1.bf16.msra.mxu0 %v4014_v45  ;;  %v4375_v45 = vld [vmem:[#allocation9 + $0x60] sm:$0xff]  }
 0x205   :  { %2994 = vmatpush1.bf16.msra.mxu1 %v4142_v46  ;;  %2954 = vmatprep.subr.bf16.mxu0 %v4023_v47  ;;  %v4376_v46 = vld [vmem:[#allocation9 + $0xe0] sm:$0xff]  }
 0x206   :  { %2995 = vmatprep.subr.bf16.mxu1 %v4151_v48  ;;  %v4377_v47 = vld [vmem:[#allocation9 + $0x20] sm:$0xff]  }
 0x207   :  { %v4378_v48 = vld [vmem:[#allocation9 + $0xa0] sm:$0xff]  }
 0x208   :  { %2955 = vmatpush1.bf16.msra.mxu0 %v4022_v57  ;;  %v140_v57 = vsub.s32 0, %v4838_v14 }
 0x209   :  { %2996 = vmatpush1.bf16.msra.mxu1 %v4150_v58  ;;  %2956 = vmatprep.subr.bf16.mxu0 %v4031_v61  ;;  %v4382_v58 = vld [vmem:[#allocation9 + $0xa8] sm:$0xff]   ;;  %v4383_v61 = vld [vmem:[#allocation9 + $0x70] sm:$0xff]  }
 0x20a   :  { %2997 = vmatprep.subr.bf16.mxu1 %v4159_v62  ;;  %v141_v13 = vrot.slane %v4841_v59, %v140_v57 }
 0x20c   :  { %2957 = vmatpush1.bf16.msra.mxu0 %v4030_v4  ;;  %v3014_v26 = vadd.f32 %v4829_v6, %v141_v13  ;;  %v4394_v6 = vld [vmem:[#allocation9 + $0x108] sm:$0xff]  }
 0x20d   :  { %2998 = vmatpush1.bf16.msra.mxu1 %v4158_v5  ;;  %2958 = vmatprep.subr.bf16.mxu0 %v4039_v8  ;;  %v153_v5 = vrot.slane %v4841_v59, %v152_v52 }
 0x20e   :  { %2999 = vmatprep.subr.bf16.mxu1 %v4167_v9 }
 0x210   :  { %2959 = vmatpush1.bf16.msra.mxu0 %v4038_v18 }
 0x211   :  { %3000 = vmatpush1.bf16.msra.mxu1 %v4166_v49  ;;  %2960 = vmatprep.subr.bf16.mxu0 %v4047_v19  ;;  %v4386_v49 = vld [vmem:[#allocation9 + $0xb0] sm:$0xff]   ;;  %v4387_v19 = vld [vmem:[#allocation9 + $0x78] sm:$0xff]  }
 0x212   :  { %3001 = vmatprep.subr.bf16.mxu1 %v4175_v22 }
 0x214   :  { %2961 = vmatpush1.bf16.msra.mxu0 %v4046_v27  ;;  %v4391_v27 = vld [vmem:[#allocation9 + $0x140] sm:$0xff]  }
 0x215   :  { %3002 = vmatpush1.bf16.msra.mxu1 %v4174_v54  ;;  %2962 = vmatprep.subr.bf16.mxu0 %v4055_v28 }
 0x216   :  { %3003 = vmatprep.subr.bf16.mxu1 %v4183_v55  ;;  %v4407_v55 = vld [vmem:[#allocation9 + $0x1c0] sm:$0xff]  }
 0x218   :  { %2963 = vmatpush1.bf16.msra.mxu0 %v4054_v31  ;;  %v3041_v31 = vpack.c.bf16 %v3014_v26, %v3014_v26 }
 0x219   :  { %3004 = vmatpush1.bf16.msra.mxu1 %v4182_v32  ;;  %4253 = vmatprep.subr.bf16.mxu0 %v4359_v34  ;;  %v4393_v32 = vld [vmem:[#allocation9 + $0x148] sm:$0xff]   ;;  %v4408_v34 = vld [vmem:[#allocation9 + $0x180] sm:$0xff]  }
 0x21a   :  { %4275 = vmatprep.subr.bf16.mxu1 %v4360_v35 }
 0x21b   :  { %2965 = vmatmul.mubr.bf16.vlgmr.msra.gmra.mrb[20].mxu0 %v4794_v21  ;;  %v4373_v21 = vld [vmem:[#allocation9 + $0x18] sm:$0xff]  }
 0x21c   :  { %3006 = vmatmul.mubr.bf16.vlgmr.msra.gmra.mrb[20].mxu1 %v4806_v33  ;;  %4254 = vmatpush3.bf16.msra.mxu0 %v4361_v37  ;;  %v4374_v33 = vld [vmem:[#allocation9 + $0x98] sm:$0xff]   ;;  %v4395_v37 = vld [vmem:[#allocation9 + $0x150] sm:$0xff]  }
 0x21d   :  { %3600 = vmatprep.mubr.bf16.mxu0 %v3042_v40  ;;  %4276 = vmatpush3.bf16.msra.mxu1 %v4362_v17  ;;  %v4410_v17 = vld [vmem:[#allocation9 + $0x188] sm:$0xff]   ;;  %v4397_v40 = vld [vmem:[#allocation9 + $0x158] sm:$0xff]  }
 0x21e   :  { %4255 = vmatprep.subr.bf16.mxu0 %v4363_v38  ;;  %4277 = vmatprep.subr.bf16.mxu1 %v4364_v39  ;;  %v4411_v38 = vld [vmem:[#allocation9 + $0x1d0] sm:$0xff]  }
 0x21f   :  { %v4396_v39 = vld [vmem:[#allocation9 + $0x110] sm:$0xff]  }
 0x220   :  { %4256 = vmatpush3.bf16.msra.mxu0 %v4365_v41  ;;  %v4412_v41 = vld [vmem:[#allocation9 + $0x190] sm:$0xff]  }
 0x221   :  { %4278 = vmatpush3.bf16.msra.mxu1 %v4366_v42  ;;  %4257 = vmatprep.subr.bf16.mxu0 %v4367_v20  ;;  %v4413_v42 = vld [vmem:[#allocation9 + $0x1d8] sm:$0xff]  }
 0x222   :  { %4279 = vmatprep.subr.bf16.mxu1 %v4368_v11  ;;  %v4398_v20 = vld [vmem:[#allocation9 + $0x118] sm:$0xff]   ;;  %v4399_v11 = vld [vmem:[#allocation9 + $0x160] sm:$0xff]  }
 0x224   :  { %4258 = vmatpush3.bf16.msra.mxu0 %v4369_v43  ;;  %v4414_v43 = vld [vmem:[#allocation9 + $0x198] sm:$0xff]  }
 0x225   :  { %4280 = vmatpush3.bf16.msra.mxu1 %v4370_v60  ;;  %4259 = vmatprep.subr.bf16.mxu0 %v4371_v44  ;;  %v4415_v60 = vld [vmem:[#allocation9 + $0x1e0] sm:$0xff]  }
 0x226   :  { %4281 = vmatprep.subr.bf16.mxu1 %v4372_v29  ;;  %v4400_v44 = vld [vmem:[#allocation9 + $0x120] sm:$0xff]   ;;  %v4401_v29 = vld [vmem:[#allocation9 + $0x168] sm:$0xff]  }
 0x228   :  { %4260 = vmatpush3.bf16.msra.mxu0 %v4373_v21  ;;  %v4416_v21 = vld [vmem:[#allocation9 + $0x1a0] sm:$0xff]  }
 0x229   :  { %4282 = vmatpush3.bf16.msra.mxu1 %v4374_v33  ;;  %4261 = vmatprep.subr.bf16.mxu0 %v4375_v45  ;;  %v4417_v33 = vld [vmem:[#allocation9 + $0x1e8] sm:$0xff]  }
 0x22a   :  { %4283 = vmatprep.subr.bf16.mxu1 %v4376_v46  ;;  %v4402_v45 = vld [vmem:[#allocation9 + $0x128] sm:$0xff]   ;;  %v4403_v46 = vld [vmem:[#allocation9 + $0x170] sm:$0xff]  }
 0x22c   :  { %4262 = vmatpush3.bf16.msra.mxu0 %v4377_v47  ;;  %v4404_v47 = vld [vmem:[#allocation9 + $0x130] sm:$0xff]  }
 0x22d   :  { %4284 = vmatpush3.bf16.msra.mxu1 %v4378_v48  ;;  %4263 = vmatprep.subr.bf16.mxu0 %v4379_v50  ;;  %v4405_v48 = vld [vmem:[#allocation9 + $0x178] sm:$0xff]  }
 0x22e   :  { %v2720_v62 = vpop.f32.mrb[8].mxu0  ;;  %4285 = vmatprep.subr.bf16.mxu1 %v4380_v51  ;;  %v4406_v50 = vld [vmem:[#allocation9 + $0x138] sm:$0xff]   ;;  %v4418_v51 = vld [vmem:[#allocation9 + $0x1a8] sm:$0xff]  }
 0x22f   :  { %v2721_v1 = vadd.f32 %v2720_v62, %v4831_v7  ;;  %v2761_v2 = vpop.f32.mrb[8].mxu1  ;;  %v2722_v3 = vpop.f32.mrb[9].mxu0  ;;  %v149_v7 = vrot.slane %v4841_v59, %v148_v63  ;;  %v4419_v63 = vld [vmem:[#allocation9 + $0x1f0] sm:$0xff]  }
 0x230   :  { %v2723_v4 = vadd.f32 %v2722_v3, %v4836_v12  ;;  %v2763_v8 = vpop.f32.mrb[9].mxu1  ;;  %v2724_v9 = vpop.f32.mrb[10].mxu0  ;;  %4264 = vmatpush3.bf16.msra.mxu0 %v4381_v56  ;;  %v4388_v12 = vld [vmem:[#allocation9 + $0xf8] sm:$0xff]   ;;  %v4420_v3 = vld [vmem:[#allocation9 + $0x1b0] sm:$0xff]  }
 0x231   :  { %v2762_v15 = vadd.f32 %v2761_v2, %v2721_v1  ;;  %v2765_v16 = vpop.f32.mrb[10].mxu1  ;;  %4286 = vmatpush3.bf16.msra.mxu1 %v4382_v58  ;;  %v2725_v18 = vpop.f32.mrb[11].mxu0  ;;  %4265 = vmatprep.subr.bf16.mxu0 %v4383_v61  ;;  %v156_v9 = vsub.s32 4, %v4838_v14 }
 0x232   :  { %v2764_v22 = vadd.f32 %v2763_v8, %v2723_v4  ;;  %v2766_v23 = vpop.f32.mrb[11].mxu1  ;;  %4287 = vmatprep.subr.bf16.mxu1 %v4384_v0  ;;  %v4422_v8 = vld [vmem:[#allocation9 + $0x1b8] sm:$0xff]  }
 0x233   :  { %v3016_v54 = vadd.f32 %v2762_v15, %v149_v7  ;;  %v157_v13 = vrot.slane %v4841_v59, %v156_v9 }
 0x234   :  { %v3017_v24 = vadd.f32 %v2764_v22, %v153_v5  ;;  %4266 = vmatpush3.bf16.msra.mxu0 %v4385_v10  ;;  %v4421_v5 = vld [vmem:[#allocation9 + $0x1f8] sm:$0xff]   ;;  %v160_v10 = vsub.s32 5, %v4838_v14 }
 0x235   :  { %4288 = vmatpush3.bf16.msra.mxu1 %v4386_v49  ;;  %4267 = vmatprep.subr.bf16.mxu0 %v4387_v19  ;;  %v3043_v35 = vpack.c.bf16 %v3016_v54, %v3016_v54 }
 0x236   :  { %v3044_v28 = vpack.c.bf16 %v3017_v24, %v3017_v24  ;;  %4289 = vmatprep.subr.bf16.mxu1 %v4388_v12  ;;  %v161_v16 = vrot.slane %v4841_v59, %v160_v10 }
 0x238   :  { %4268 = vmatpush3.bf16.msra.mxu0 %v4389_v25  ;;  %3640 = vmatprep.mubr.bf16.mxu1 %v3044_v28  ;;  %v164_v28 = vsub.s32 6, %v4838_v14 }
 0x239   :  { %4290 = vmatpush3.bf16.msra.mxu1 %v4390_v53  ;;  %4297 = vmatprep.subr.bf16.mxu0 %v4391_v27 }
 0x23a   :  { %4319 = vmatprep.subr.bf16.mxu1 %v4407_v55  ;;  %v168_v55 = vsub.s32 7, %v4838_v14 }
 0x23b   :  { %3601 = vmatmul.mubr.bf16.vlgmr.msra.gmra.mrb[24].mxu0 %v3041_v31 }
 0x23c   :  { %3641 = vmatmul.mubr.bf16.vlgmr.msra.gmra.mrb[24].mxu1 %v3043_v35  ;;  %4298 = vmatpush3.bf16.msra.mxu0 %v4392_v30 }
 0x23d   :  { %4299 = vmatprep.subr.bf16.mxu0 %v4393_v32  ;;  %4320 = vmatpush3.bf16.msra.mxu1 %v4408_v34  ;;  %v165_v32 = vrot.slane %v4841_v59, %v164_v28 }
 0x23e   :  { %4321 = vmatprep.subr.bf16.mxu1 %v4409_v36 }
 0x240   :  { %4300 = vmatpush3.bf16.msra.mxu0 %v4394_v6  ;;  %v169_v6 = vrot.slane %v4841_v59, %v168_v55  ;;  %v4250_v55 = vld [vmem:[#allocation14] ss:$0 sm:$0xff] }
 0x241   :  { %4301 = vmatprep.subr.bf16.mxu0 %v4395_v37  ;;  %4322 = vmatpush3.bf16.msra.mxu1 %v4410_v17 }
 0x242   :  { %4323 = vmatprep.subr.bf16.mxu1 %v4411_v38 }
 0x244   :  { %4302 = vmatpush3.bf16.msra.mxu0 %v4396_v39 }
 0x245   :  { %4303 = vmatprep.subr.bf16.mxu0 %v4397_v40  ;;  %4324 = vmatpush3.bf16.msra.mxu1 %v4412_v41 }
 0x246   :  { %4325 = vmatprep.subr.bf16.mxu1 %v4413_v42 }
 0x248   :  { %4304 = vmatpush3.bf16.msra.mxu0 %v4398_v20 }
 0x249   :  { %4305 = vmatprep.subr.bf16.mxu0 %v4399_v11  ;;  %4326 = vmatpush3.bf16.msra.mxu1 %v4414_v43 }
 0x24a   :  { %4327 = vmatprep.subr.bf16.mxu1 %v4415_v60 }
 0x24c   :  { %4306 = vmatpush3.bf16.msra.mxu0 %v4400_v44 }
 0x24d   :  { %4307 = vmatprep.subr.bf16.mxu0 %v4401_v29  ;;  %4328 = vmatpush3.bf16.msra.mxu1 %v4416_v21  ;;  %v4184_v29 = vld [vmem:[#allocation11] ss:$0 sm:$0xff] }
 0x24e   :  { %4329 = vmatprep.subr.bf16.mxu1 %v4417_v33 }
 0x250   :  { %4308 = vmatpush3.bf16.msra.mxu0 %v4402_v45 }
 0x251   :  { %4309 = vmatprep.subr.bf16.mxu0 %v4403_v46  ;;  %4330 = vmatpush3.bf16.msra.mxu1 %v4418_v51 }
 0x252   :  { %4331 = vmatprep.subr.bf16.mxu1 %v4419_v63 }
 0x254   :  { %4310 = vmatpush3.bf16.msra.mxu0 %v4404_v47 }
 0x255   :  { %4311 = vmatprep.subr.bf16.mxu0 %v4405_v48  ;;  %4332 = vmatpush3.bf16.msra.mxu1 %v4420_v3 }
 0x256   :  { %4333 = vmatprep.subr.bf16.mxu1 %v4421_v5 }
 0x258   :  { %4312 = vmatpush3.bf16.msra.mxu0 %v4406_v50 }
 0x259   :  { %4334 = vmatpush3.bf16.msra.mxu1 %v4422_v8 }
 0x26e   :  { %v2802_v52 = vpop.f32.mrb[12].mxu0 }
 0x26f   :  { %v2843_v56 = vpop.f32.mrb[12].mxu1  ;;  %v2804_v57 = vpop.f32.mrb[13].mxu0 }
 0x270   :  { %v2844_v58 = vadd.f32 %v2843_v56, %v2802_v52  ;;  %v2845_v61 = vpop.f32.mrb[13].mxu1  ;;  %v2806_v62 = vpop.f32.mrb[14].mxu0 }
 0x271   :  { %v2846_v0 = vadd.f32 %v2845_v61, %v2804_v57  ;;  %v2847_v1 = vpop.f32.mrb[14].mxu1  ;;  %v2807_v2 = vpop.f32.mrb[15].mxu0 }
 0x272   :  { %v2848_v4 = vpop.f32.mrb[15].mxu1 }
 0x2ae   :  { %v2884_v15 = vpop.f32.mrb[16].mxu0 }
 0x2af   :  { %v2885_v18 = vadd.f32 %v2884_v15, %v2844_v58  ;;  %v2925_v49 = vpop.f32.mrb[16].mxu1  ;;  %v2886_v19 = vpop.f32.mrb[17].mxu0 }
 0x2b0   :  { %v2887_v7 = vadd.f32 %v2886_v19, %v2846_v0  ;;  %v2927_v22 = vpop.f32.mrb[17].mxu1  ;;  %v2888_v23 = vpop.f32.mrb[18].mxu0 }
 0x2b1   :  { %v3018_v12 = vadd.f32 %v2885_v18, %v157_v13  ;;  %v2929_v24 = vpop.f32.mrb[18].mxu1  ;;  %v2889_v25 = vpop.f32.mrb[19].mxu0 }
 0x2b2   :  { %v3019_v26 = vadd.f32 %v2887_v7, %v161_v16  ;;  %v2930_v53 = vpop.f32.mrb[19].mxu1 }
 0x2b3   :  { %v3045_v54 = vpack.c.bf16 %v3018_v12, %v3018_v12 }
 0x2b4   :  { %v3046_v27 = vpack.c.bf16 %v3019_v26, %v3019_v26 }
 0x2b6   :  { %3680 = vmatprep.mubr.bf16.mxu0 %v3046_v27 }
 0x2b7   :  { %3681 = vmatmul.mubr.bf16.vlgmr.msra.gmra.mrb[28].mxu0 %v3045_v54  ;;  %v4249_v54 = vld [vmem:[#allocation12] ss:$0 sm:$0xff] }
 0x2ee   :  { %v2966_v30 = vpop.f32.mrb[20].mxu0 }
 0x2ef   :  { %v2967_v31 = vadd.f32 %v2966_v30, %v2925_v49  ;;  %v3007_v34 = vpop.f32.mrb[20].mxu1  ;;  %v2968_v35 = vpop.f32.mrb[21].mxu0 }
 0x2f0   :  { %v2969_v36 = vadd.f32 %v2968_v35, %v2927_v22  ;;  %v3009_v37 = vpop.f32.mrb[21].mxu1  ;;  %v2970_v17 = vpop.f32.mrb[22].mxu0 }
 0x2f1   :  { %v3008_v38 = vadd.f32 %v3007_v34, %v2967_v31  ;;  %v3011_v39 = vpop.f32.mrb[22].mxu1  ;;  %v2971_v40 = vpop.f32.mrb[23].mxu0 }
 0x2f2   :  { %v3010_v41 = vadd.f32 %v3009_v37, %v2969_v36  ;;  %v3012_v42 = vpop.f32.mrb[23].mxu1  ;;  %v4252_v36 = vld [vmem:[#allocation3] ss:$0 sm:$0xff] }
 0x2f3   :  { %v3020_v20 = vadd.f32 %v3008_v38, %v165_v32  ;;  %v4251_v32 = vld [vmem:[#allocation15] ss:$0 sm:$0xff] }
 0x2f4   :  { %v3021_v11 = vadd.f32 %v3010_v41, %v169_v6 }
 0x2f5   :  { %v3047_v14 = vpack.c.bf16 %v3020_v20, %v3020_v20 }
 0x2f6   :  { %v3048_v43 = vpack.c.bf16 %v3021_v11, %v3021_v11 }
 0x2f8   :  { %3720 = vmatprep.mubr.bf16.mxu1 %v3048_v43 }
 0x2f9   :  { %3721 = vmatmul.mubr.bf16.vlgmr.msra.gmra.mrb[28].mxu1 %v3047_v14 }
 0x30e   :  { %v4269_v60 = vpop.f32.mrb[24].mxu0 }
 0x30f   :  { %v4291_v44 = vpop.f32.mrb[24].mxu1  ;;  %v4270_v21 = vpop.f32.mrb[25].mxu0 }
 0x310   :  { %v4271_v33 = vadd.f32 %v4270_v21, %v4269_v60  ;;  %v4292_v45 = vpop.f32.mrb[25].mxu1  ;;  %v4272_v59 = vpop.f32.mrb[26].mxu0 }
 0x311   :  { %v4293_v46 = vadd.f32 %v4292_v45, %v4291_v44  ;;  %v4294_v47 = vpop.f32.mrb[26].mxu1  ;;  %v4273_v48 = vpop.f32.mrb[27].mxu0 }
 0x312   :  { %v3603_v50 = vadd.f32 %v4271_v33, %v4184_v29  ;;  %v4295_v51 = vpop.f32.mrb[27].mxu1 }
 0x314   :  { %v3643_v52 = vadd.f32 %v4293_v46, %v3603_v50 }
 0x38a   :  { %v4313_v56 = vpop.f32.mrb[28].mxu0 }
 0x38b   :  { %v4314_v57 = vpop.f32.mrb[29].mxu0 }
 0x38c   :  { %v4315_v58 = vadd.f32 %v4314_v57, %v4313_v56  ;;  %v4316_v61 = vpop.f32.mrb[30].mxu0 }
 0x38d   :  { %v4317_v62 = vpop.f32.mrb[31].mxu0 }
 0x38e   :  { %v3683_v63 = vadd.f32 %v4315_v58, %v3643_v52 }
 0x3cc   :  { %v4335_v0 = vpop.f32.mrb[28].mxu1 }
 0x3cd   :  { %v4336_v1 = vpop.f32.mrb[29].mxu1 }
 0x3ce   :  { %v4337_v2 = vadd.f32 %v4336_v1, %v4335_v0  ;;  %v4338_v3 = vpop.f32.mrb[30].mxu1 }
 0x3cf   :  { %v4339_v4 = vpop.f32.mrb[31].mxu1 }
 0x3d0   :  { %v3723_v5 = vadd.f32 %v4337_v2, %v3683_v63 }
 0x3d2   :  { %v3728_v8 = vrot.slane %v3723_v5, 4 }
 0x3d4   :  { %v3729_v9 = vadd.f32 %v3728_v8, %v3723_v5 }
 0x3d6   :  { %v3730_v10 = vrot.slane %v3729_v9, 2 }
 0x3d8   :  { %v3731_v13 = vadd.f32 %v3730_v10, %v3729_v9 }
 0x3da   :  { %v3732_v15 = vrot.slane %v3731_v13, 1 }
 0x3dc   :  { %v3733_v16 = vadd.f32 %v3732_v15, %v3731_v13 }
 0x3de   :  { %v3735_v18 = vmul.f32 0.125, %v3733_v16 }
 0x3e0   :  { %v3736_v49 = vsub.f32 %v3723_v5, %v3735_v18 }
 0x3e2   :  { %v3737_v19 = vmul.f32 %v3736_v49, %v3736_v49 }
 0x3e4   :  { %v3738_v7 = vrot.slane %v3737_v19, 4 }
 0x3e6   :  { %v3739_v22 = vadd.f32 %v3738_v7, %v3737_v19 }
 0x3e8   :  { %v3740_v23 = vrot.slane %v3739_v22, 2 }
 0x3ea   :  { %v3741_v12 = vadd.f32 %v3740_v23, %v3739_v22 }
 0x3ec   :  { %v3742_v24 = vrot.slane %v3741_v12, 1 }
 0x3ee   :  { %v3743_v25 = vadd.f32 %v3742_v24, %v3741_v12 }
 0x3f0   :  { %v3744_v26 = vmul.f32 0.125, %v3743_v25 }
 0x3f2   :  { %v3745_v53 = vadd.f32 1e-05, %v3744_v26 }
 0x3f4   :  { %4423 = vrsqrt.f32 %v3745_v53 }
 0x3fe   :  { %v4424_v27 = vpop.eup %4423 }
 0x3ff   :  { %v3747_v28 = vmul.f32 %v4424_v27, %v3736_v49 }
 0x401   :  { %v3755_v30 = vmul.f32 %v4249_v54, %v3747_v28 }
 0x403   :  { %v3763_v31 = vadd.f32 %v4250_v55, %v3755_v30 }
 0x405   :  { %v3764_v34 = vmax.f32 %v3763_v31, 0.0 }
 0x407   :  { %v3772_v35 = vmul.f32 %v4251_v32, %v3764_v34 }
 0x409   :  { %3773 = vadd.xlane.f32.xlu0 %v3772_v35 }
 0x496   :  { %v3774_v6 = vpop.xlane.xlu0 %3773 }
 0x497   :  { %v3782_v37 = vadd.f32 %v4252_v36, %v3774_v6 }
 0x499   :  { %3784 = vst.msk [vmem:[%s4876_s9] sm:$0xff] %vm3783_vm0, %v3782_v37 }
 0x49a   :  { %3789 = vsyncpa [#allocation5], 1 }
 0x49b   :  { %3790 = vsyncpa [#allocation7], 1 }
 0x49c   :  { %3791 = vsyncpa [#allocation10], 1 }
 0x49d   :  { %3792 = vsyncpa [#allocation13], 1 }
 0x49e   :  { %3793 = vsyncpa [#allocation16], 1 }

</bundles_post_ra>
